<compile_context>
chip_gen: v5e
topology: v5e:2x2
jax: 0.10.0
libtpu: 0.0.40
codegen_flags: <defaults>
</compile_context>

<pallas_src>
import numpy as np
import jax
import jax.numpy as jnp
from jax.experimental import pallas as pl
from jax.experimental.pallas import tpu as pltpu

# ---------------- constants matching torchaudio.transforms.MelSpectrogram ----------------
SAMPLE_RATE = 16000
N_FFT = 512
WIN_LENGTH = 400
HOP = 160
F_MIN = 20.0
F_MAX = 7600.0
N_MELS = 80

N_FREQS_FULL = N_FFT // 2 + 1   # 257 rFFT bins
N_FREQS = 256                   # truncated: mel filterbank weight is exactly 0 for bins >= 244
N_MELS_PAD = 128                # lane-dense output width
N_SEG = 4                       # a 512-sample frame spans 4 consecutive 160-sample hop segments
MAX_TT = 512                    # frames (time) per grid step


# ---------------- deterministic parameter construction (numpy, no torch) ----------------
def _dft_weight_split():
    """Window-folded [cos | sin] DFT matrix, split along n_fft into 4 hop-aligned K-chunks.
    Returns (4, HOP, 2*N_FREQS); chunk 3 only has 32 valid rows (rest zero)."""
    # torch.hamming_window(400, periodic=True)  (module passes window_fn=torch.hamming_window)
    n = np.arange(WIN_LENGTH, dtype=np.float64)
    win = 0.54 - 0.46 * np.cos(2.0 * np.pi * n / WIN_LENGTH)
    lp = (N_FFT - WIN_LENGTH) // 2            # torch.stft center-pads the window to n_fft
    w = np.zeros(N_FFT, dtype=np.float64)
    w[lp:lp + WIN_LENGTH] = win

    nn = np.arange(N_FFT, dtype=np.float64)[:, None]
    kk = np.arange(N_FREQS, dtype=np.float64)[None, :]
    ang = 2.0 * np.pi * nn * kk / N_FFT
    wdft = np.concatenate([w[:, None] * np.cos(ang),
                           w[:, None] * np.sin(ang)], axis=1)     # (512, 512); sin sign irrelevant

    wsplit = np.zeros((N_SEG, HOP, 2 * N_FREQS), dtype=np.float32)
    for k in range(N_SEG):
        rows = min(HOP, N_FFT - k * HOP)                          # 160,160,160,32
        wsplit[k, :rows] = wdft[k * HOP: k * HOP + rows]
    return wsplit


def _mel_filterbank():
    """torchaudio.functional.melscale_fbanks(257, 20, 7600, 80, 16000, norm=None, mel_scale='htk'),
    truncated to 256 freq bins (exact for f_max=7600) and padded to 128 mel columns."""
    def hz_to_mel(f):
        return 2595.0 * np.log10(1.0 + f / 700.0)

    def mel_to_hz(m):
        return 700.0 * (10.0 ** (m / 2595.0) - 1.0)

    all_freqs = np.linspace(0.0, SAMPLE_RATE // 2, N_FREQS_FULL)
    m_pts = np.linspace(hz_to_mel(F_MIN), hz_to_mel(F_MAX), N_MELS + 2)
    f_pts = mel_to_hz(m_pts)
    f_diff = f_pts[1:] - f_pts[:-1]
    slopes = f_pts[None, :] - all_freqs[:, None]
    down = (-slopes[:, :-2]) / f_diff[:-1]
    up = slopes[:, 2:] / f_diff[1:]
    fb = np.maximum(0.0, np.minimum(down, up))                    # (257, 80)

    fb_p = np.zeros((N_FREQS, N_MELS_PAD), dtype=np.float32)
    fb_p[:, :N_MELS] = fb[:N_FREQS].astype(np.float32)            # bins 244..256 all-zero -> exact
    return fb_p


# ---------------- Pallas kernel ----------------
def _featproc_kernel(seg_ref, wdft_ref, mel_ref, o_ref):
    # seg_ref : (1, 4, TT, HOP) bf16   hop-shifted waveform segments; frame t = concat_k seg[k][t]
    # wdft_ref: (4, HOP, 512)  bf16    windowed [cos|sin] DFT, split along n_fft into 4 K-chunks
    # mel_ref : (256, 128)     bf16    mel filterbank
    # o_ref   : (1, TT, 128)   f32     un-normalized log-mel
    # Windowed DFT as 4 accumulated MXU matmuls (no in-kernel frame assembly).
    spec = jnp.dot(seg_ref[0, 0], wdft_ref[0], preferred_element_type=jnp.float32)
    for k in range(1, N_SEG):
        spec = spec + jnp.dot(seg_ref[0, k], wdft_ref[k], preferred_element_type=jnp.float32)

    re = spec[:, :N_FREQS]
    im = spec[:, N_FREQS:]
    power = re * re + im * im                                     # |STFT|^2, f32

    mel = jnp.dot(power.astype(jnp.bfloat16), mel_ref[...],
                  preferred_element_type=jnp.float32)             # (TT, 128)
    o_ref[0] = jnp.log(mel + 1e-6)                                # natural log, +1e-6 (matches ref)


def _round_up(x, m):
    return ((x + m - 1) // m) * m


def feature_extraction_layer(x, w_dft, mel_fb):
    """x: [batch, wav_len] f32 -> [batch, N_MELS, n_frames] f32 (mean-normalized log-mel)."""
    B, wav_len = x.shape
    n_frames = 1 + wav_len // HOP

    TT = min(MAX_TT, _round_up(n_frames, 8))           # time tile (multiple of 8 sublanes)
    if B == 1 and n_frames > 8:
        # keep >= 2 time tiles so both v7x TensorCores get work
        TT = min(TT, _round_up((n_frames + 1) // 2, 8))
    n_tiles = pl.cdiv(n_frames, TT)
    t_pad = n_tiles * TT

    # center=True reflect padding (torchaudio Spectrogram default); cast to bf16 once.
    pad = N_FFT // 2
    xp = jnp.pad(x, ((0, 0), (pad, pad)), mode="reflect").astype(jnp.bfloat16)
    need = (t_pad + N_SEG - 1) * HOP                    # samples needed by padded frame t_pad-1
    if xp.shape[1] < need:
        xp = jnp.pad(xp, ((0, 0), (0, need - xp.shape[1])))

    # frame t = padded_wav[t*HOP : t*HOP + 512] = [seg0[t] | seg1[t] | seg2[t] | seg3[t][:32]].
    # Expose the 4 hop-shifted row views so the DMA does the "gather" with aligned full rows.
    segs = [xp[:, k * HOP: k * HOP + t_pad * HOP].reshape(B, t_pad, HOP) for k in range(N_SEG)]
    wav4 = jnp.stack(segs, axis=1)                      # (B, 4, t_pad, HOP) bf16

    out = pl.pallas_call(
        _featproc_kernel,
        out_shape=jax.ShapeDtypeStruct((B, t_pad, N_MELS_PAD), jnp.float32),
        grid_spec=pltpu.PrefetchScalarGridSpec(
            num_scalar_prefetch=0,
            grid=(B, n_tiles),
            in_specs=[
                # 4 hop-shifted segment rows of this time tile
                pl.BlockSpec((1, N_SEG, TT, HOP), lambda b, j: (b, 0, j, 0)),
                # constant weights: constant index map + single buffer (resident)
                pl.BlockSpec((N_SEG, HOP, 2 * N_FREQS), lambda b, j: (0, 0, 0),
                             pipeline_mode=pl.Buffered(1)),
                pl.BlockSpec((N_FREQS, N_MELS_PAD), lambda b, j: (0, 0),
                             pipeline_mode=pl.Buffered(1)),
            ],
            out_specs=pl.BlockSpec((1, TT, N_MELS_PAD), lambda b, j: (b, j, 0)),
        ),
        compiler_params=pltpu.CompilerParams(
            dimension_semantics=("parallel", "parallel"),
            vmem_limit_bytes=32 * 1024 * 1024,
        ),
    )(wav4, w_dft, mel_fb)

    # slice valid frames / mel bins, per-utterance mean-over-time norm (f32), then transpose.
    # (padded frames beyond n_frames hold log(1e-6) on zero data; slice BEFORE the mean.)
    logmel = out[:, :n_frames, :N_MELS]                              # (B, T, 80)
    logmel = logmel - jnp.mean(logmel, axis=1, keepdims=True)        # torch.mean(x, dim=2, keepdim=True)
    return jnp.transpose(logmel, (0, 2, 1))                          # (B, 80, T)


# TODO(synk): SpecAugment (spec_aug=True path) relies on torch.randint/randperm host RNG at call
# time; the default forward (spec_aug=False) does not exercise it, so it is omitted.

if __name__ == "__main__":
    w_dft = jnp.asarray(_dft_weight_split(), dtype=jnp.bfloat16)    # bf16 DFT weight, f32 accumulate
    mel_fb = jnp.asarray(_mel_filterbank(), dtype=jnp.bfloat16)     # bf16 mel filterbank

    key = jax.random.PRNGKey(0)
    batch, wav_len = 2, 2560                                        # -> 17 frames (hop 160, center pad)
    x = jax.random.normal(key, (batch, wav_len), dtype=jnp.float32)

    feat = jax.jit(feature_extraction_layer)
    y = jax.block_until_ready(feat(x, w_dft, mel_fb))

    assert y.shape == (batch, N_MELS, 1 + wav_len // HOP), y.shape
    assert bool(jnp.all(jnp.isfinite(y)))
    # per-(batch, mel) mean over time should be ~0 after mean normalization
    assert float(jnp.max(jnp.abs(jnp.mean(y, axis=2)))) < 1e-3

    print("KERNEL_OK")
</pallas_src>

<mosaic_0001>
module attributes {stable_mosaic.version = 11 : i64} {
  func.func @_featproc_kernel(%arg0: i32, %arg1: i32, %arg2: memref<1x4x24x160xbf16, #tpu.memory_space<vmem>>, %arg3: memref<4x160x512xbf16, #tpu.memory_space<vmem>>, %arg4: memref<256x128xbf16, #tpu.memory_space<vmem>>, %arg5: memref<1x24x128xf32, #tpu.memory_space<vmem>>) attributes {dimension_semantics = [#tpu.dimension_semantics<parallel>, #tpu.dimension_semantics<parallel>], iteration_bounds = array<i64: 2, 1>, scalar_prefetch = 0 : i64, scratch_operands = 0 : i64, tpu.core_type = #tpu.core_type<tc>, window_params = [{transform_indices = @transform_0, window_bounds = array<i64: 1, 4, 24, 160>}, {pipeline_mode = #tpu.pipeline_mode<synchronous>, transform_indices = @transform_1, window_bounds = array<i64: 4, 160, 512>}, {pipeline_mode = #tpu.pipeline_mode<synchronous>, transform_indices = @transform_2, window_bounds = array<i64: 256, 128>}, {transform_indices = @transform_3, window_bounds = array<i64: 1, 24, 128>}]} {
    %c0 = arith.constant 0 : index
    %c0_0 = arith.constant 0 : index
    %c0_1 = arith.constant 0 : index
    %c0_2 = arith.constant 0 : index
    %0 = vector.load %arg2[%c0, %c0_0, %c0_1, %c0_2] : memref<1x4x24x160xbf16, #tpu.memory_space<vmem>>, vector<1x1x24x160xbf16>
    %1 = vector.shape_cast %0 : vector<1x1x24x160xbf16> to vector<24x160xbf16>
    %c0_3 = arith.constant 0 : index
    %c0_4 = arith.constant 0 : index
    %c0_5 = arith.constant 0 : index
    %2 = vector.load %arg3[%c0_3, %c0_4, %c0_5] : memref<4x160x512xbf16, #tpu.memory_space<vmem>>, vector<1x160x512xbf16>
    %3 = vector.shape_cast %2 : vector<1x160x512xbf16> to vector<160x512xbf16>
    %cst = arith.constant dense<0.000000e+00> : vector<24x512xf32>
    %4 = tpu.matmul %1, %3, %cst {dimension_numbers = #tpu.dot_dimension_numbers<[1], [0], [0], [1], [0, 0, 1, 1], [], []>} : vector<24x160xbf16>, vector<160x512xbf16>, vector<24x512xf32> -> vector<24x512xf32>
    %c0_6 = arith.constant 0 : index
    %c1 = arith.constant 1 : index
    %c0_7 = arith.constant 0 : index
    %c0_8 = arith.constant 0 : index
    %5 = vector.load %arg2[%c0_6, %c1, %c0_7, %c0_8] : memref<1x4x24x160xbf16, #tpu.memory_space<vmem>>, vector<1x1x24x160xbf16>
    %6 = vector.shape_cast %5 : vector<1x1x24x160xbf16> to vector<24x160xbf16>
    %c1_9 = arith.constant 1 : index
    %c0_10 = arith.constant 0 : index
    %c0_11 = arith.constant 0 : index
    %7 = vector.load %arg3[%c1_9, %c0_10, %c0_11] : memref<4x160x512xbf16, #tpu.memory_space<vmem>>, vector<1x160x512xbf16>
    %8 = vector.shape_cast %7 : vector<1x160x512xbf16> to vector<160x512xbf16>
    %cst_12 = arith.constant dense<0.000000e+00> : vector<24x512xf32>
    %9 = tpu.matmul %6, %8, %cst_12 {dimension_numbers = #tpu.dot_dimension_numbers<[1], [0], [0], [1], [0, 0, 1, 1], [], []>} : vector<24x160xbf16>, vector<160x512xbf16>, vector<24x512xf32> -> vector<24x512xf32>
    %10 = arith.addf %4, %9 : vector<24x512xf32>
    %c0_13 = arith.constant 0 : index
    %c2 = arith.constant 2 : index
    %c0_14 = arith.constant 0 : index
    %c0_15 = arith.constant 0 : index
    %11 = vector.load %arg2[%c0_13, %c2, %c0_14, %c0_15] : memref<1x4x24x160xbf16, #tpu.memory_space<vmem>>, vector<1x1x24x160xbf16>
    %12 = vector.shape_cast %11 : vector<1x1x24x160xbf16> to vector<24x160xbf16>
    %c2_16 = arith.constant 2 : index
    %c0_17 = arith.constant 0 : index
    %c0_18 = arith.constant 0 : index
    %13 = vector.load %arg3[%c2_16, %c0_17, %c0_18] : memref<4x160x512xbf16, #tpu.memory_space<vmem>>, vector<1x160x512xbf16>
    %14 = vector.shape_cast %13 : vector<1x160x512xbf16> to vector<160x512xbf16>
    %cst_19 = arith.constant dense<0.000000e+00> : vector<24x512xf32>
    %15 = tpu.matmul %12, %14, %cst_19 {dimension_numbers = #tpu.dot_dimension_numbers<[1], [0], [0], [1], [0, 0, 1, 1], [], []>} : vector<24x160xbf16>, vector<160x512xbf16>, vector<24x512xf32> -> vector<24x512xf32>
    %16 = arith.addf %10, %15 : vector<24x512xf32>
    %c0_20 = arith.constant 0 : index
    %c3 = arith.constant 3 : index
    %c0_21 = arith.constant 0 : index
    %c0_22 = arith.constant 0 : index
    %17 = vector.load %arg2[%c0_20, %c3, %c0_21, %c0_22] : memref<1x4x24x160xbf16, #tpu.memory_space<vmem>>, vector<1x1x24x160xbf16>
    %18 = vector.shape_cast %17 : vector<1x1x24x160xbf16> to vector<24x160xbf16>
    %c3_23 = arith.constant 3 : index
    %c0_24 = arith.constant 0 : index
    %c0_25 = arith.constant 0 : index
    %19 = vector.load %arg3[%c3_23, %c0_24, %c0_25] : memref<4x160x512xbf16, #tpu.memory_space<vmem>>, vector<1x160x512xbf16>
    %20 = vector.shape_cast %19 : vector<1x160x512xbf16> to vector<160x512xbf16>
    %cst_26 = arith.constant dense<0.000000e+00> : vector<24x512xf32>
    %21 = tpu.matmul %18, %20, %cst_26 {dimension_numbers = #tpu.dot_dimension_numbers<[1], [0], [0], [1], [0, 0, 1, 1], [], []>} : vector<24x160xbf16>, vector<160x512xbf16>, vector<24x512xf32> -> vector<24x512xf32>
    %22 = arith.addf %16, %21 : vector<24x512xf32>
    %23 = vector.extract_strided_slice %22 {offsets = [0, 0], sizes = [24, 256], strides = [1, 1]} : vector<24x512xf32> to vector<24x256xf32>
    %24 = vector.extract_strided_slice %22 {offsets = [0, 256], sizes = [24, 256], strides = [1, 1]} : vector<24x512xf32> to vector<24x256xf32>
    %25 = arith.mulf %23, %23 : vector<24x256xf32>
    %26 = arith.mulf %24, %24 : vector<24x256xf32>
    %27 = arith.addf %25, %26 : vector<24x256xf32>
    %28 = arith.truncf %27 : vector<24x256xf32> to vector<24x256xbf16>
    %c0_27 = arith.constant 0 : index
    %c0_28 = arith.constant 0 : index
    %29 = vector.load %arg4[%c0_27, %c0_28] : memref<256x128xbf16, #tpu.memory_space<vmem>>, vector<256x128xbf16>
    %cst_29 = arith.constant dense<0.000000e+00> : vector<24x128xf32>
    %30 = tpu.matmul %28, %29, %cst_29 {dimension_numbers = #tpu.dot_dimension_numbers<[1], [0], [0], [1], [0, 0, 1, 1], [], []>} : vector<24x256xbf16>, vector<256x128xbf16>, vector<24x128xf32> -> vector<24x128xf32>
    %cst_30 = arith.constant 9.99999997E-7 : f32
    %31 = vector.broadcast %cst_30 : f32 to vector<24x128xf32>
    %32 = arith.addf %30, %31 : vector<24x128xf32>
    %33 = math.log %32 : vector<24x128xf32>
    %c0_31 = arith.constant 0 : index
    %c0_32 = arith.constant 0 : index
    %c0_33 = arith.constant 0 : index
    %34 = vector.load %arg5[%c0_31, %c0_32, %c0_33] : memref<1x24x128xf32, #tpu.memory_space<vmem>>, vector<1x24x128xf32>
    %35 = vector.shape_cast %34 : vector<1x24x128xf32> to vector<24x128xf32>
    %36 = vector.shape_cast %33 : vector<24x128xf32> to vector<1x24x128xf32>
    tpu.vector_store %arg5[%c0_31, %c0_32, %c0_33], %36 {strides = array<i32>} : memref<1x24x128xf32, #tpu.memory_space<vmem>>, vector<1x24x128xf32>,
    return
  }
  func.func @transform_0(%arg0: i32, %arg1: i32) -> (i32, i32, i32, i32) {
    %c0_i32 = arith.constant 0 : i32
    %c0_i32_0 = arith.constant 0 : i32
    %c0_i32_1 = arith.constant 0 : i32
    return %arg0, %c0_i32, %arg1, %c0_i32_0 : i32, i32, i32, i32
  }
  func.func @transform_1(%arg0: i32, %arg1: i32) -> (i32, i32, i32) {
    %c0_i32 = arith.constant 0 : i32
    %c0_i32_0 = arith.constant 0 : i32
    %c0_i32_1 = arith.constant 0 : i32
    %c0_i32_2 = arith.constant 0 : i32
    return %c0_i32, %c0_i32_0, %c0_i32_1 : i32, i32, i32
  }
  func.func @transform_2(%arg0: i32, %arg1: i32) -> (i32, i32) {
    %c0_i32 = arith.constant 0 : i32
    %c0_i32_0 = arith.constant 0 : i32
    %c0_i32_1 = arith.constant 0 : i32
    return %c0_i32, %c0_i32_0 : i32, i32
  }
  func.func @transform_3(%arg0: i32, %arg1: i32) -> (i32, i32, i32) {
    %c0_i32 = arith.constant 0 : i32
    %c0_i32_0 = arith.constant 0 : i32
    return %arg0, %arg1, %c0_i32 : i32, i32, i32
  }
}

</mosaic_0001>

<bundles_post_ra>
// kernel: feature_extraction_layer.1
= control target key start
LH: loop header
LB: loop body
LE: loop exit
PB: predicated region body
PF: predicated region fallthrough
CT: control target
= control target key end

     0   :  { %8 = vsyncpa [#allocation3], 0  ;;  %s3289_s12 = smov 0   ;;  %s3291_s13 = smov 0   ;;  %s3661_s0 = inlined_call_operand.vmem [shape: bf16[2,4,24,160], index: 0, kind: input, shape index: {}]   ;;  %s3662_s1 = inlined_call_operand.hbm [shape: bf16[4,160,512], index: 1, kind: input, shape index: {}]   ;;  %s3663_s2 = inlined_call_operand.vmem [shape: bf16[256,128], index: 2, kind: input, shape index: {}]   ;;  %s3664_s3 = inlined_call_operand.vmem [shape: f32[2,24,128], index: 3, kind: output, shape index: {}]  }
   0x1   :  { %s3293_s14 = smov 0  }
   0x2 LB: > { %s2191_s15 = sadd.s32 4294967295, %s3264_s14   ;;  %s26_s16 = sadd.s32 1, %s3260_s13  ;;  %s3264_s14 = sphi %s3293_s14, %s14_s14   ;;  %s3260_s13 = sphi %s3291_s13, %s3666_s13   ;;  %s3256_s12 = sphi %s3289_s12, %s3665_s12  }
   0x3   : > { %p28_p0 = scmp.ge.s32.totalorder %s26_s16, 2  ;;  %p2193_p1 = scmp.ge.s32.totalorder %s3264_s14, 1 }
   0x4   : > { %p129_p2 = scmp.lt.s32.totalorder %s3264_s14, 3  ;;  %p3173_p4 = scmp.eq.s32.totalorder %s2191_s15, 0 }
   0x5   : > { %s3668_s16 = smov (%p28_p0, %s26_s16), 0  ;;  %s140_s19 = sshll.u32 %s3662_s1, 4  ;;  %s141_s19 = int_to_ptr.hbm [resolvable:$true] %s140_s19 }
   0x6   : > { %p130_p3 = pnand %p2193_p1, %p129_p2  ;;  %s3266_s20 = smov [#allocation2]  }
   0x7   : > { %s142_s21 = sshll.u32 %s3266_s20, 4  ;;  %s3267_s22 = smov 256   ;;  %s143_s21 = int_to_ptr.vmem [resolvable:$true] %s142_s21 }
   0x8   : > { %p3169_p5 = pneg %p130_p3  ;;  %s3268_s23 = smov 16  }
   0x9   : > { %175 = sbr.rel (%p130_p3) target bundleno = 586 (0x24a), region = 32 }
   0xa   : > { %p3170_p6 = pnand %p3173_p4, %p3169_p5 }
   0xc   : > { %3172 = dma.hbm_to_vmem [thread:$0]  (!%p3170_p6), %s141_s19, 20480, %s143_s21, [#allocation3], %s3267_s22, %s3267_s22, %s3268_s23  }
   0xe   : > { %3251 = dma.done.wait (%p3173_p4), [#allocation3], 20480  }
   0xf   : > { %3253 = vsyncadd (%p3173_p4), [#allocation3], 4294946816  ;;  %p210_p7 = scmp.lt.s32.totalorder %s3256_s12, 1  ;;  %v2325_v0 = vld [vmem:[#allocation2 + $0x220] sm:$0xf]  ;;  %vm534_vm0 = vcmask 261120  }
  0x10   : > { %v3053_v1 = vld [vmem:[#allocation2 + $0x22c] sm:$0xf0]  ;;  %v2357_v2 = vld [vmem:[#allocation2 + $0x260] sm:$0xf]  ;;  %v3051_v5 = vld [vmem:[#allocation2 + $0x224] sm:$0xf] }
  0x11   : > { %s3670_s12 = smov (!%p210_p7, %s3256_s12), 1  ;;  %v2326_v3 = vor.u32 %v3053_v1, %v2325_v0  ;;  %v3061_v4 = vld [vmem:[#allocation2 + $0x26c] sm:$0xf0]  ;;  %v2327_v6 = vld [vmem:[#allocation2 + $0x230] sm:$0xf0] }
  0x12   : > { %s3163_s24 = smul.u32 96, %s3670_s12  ;;  %v2358_v7 = vor.u32 %v3061_v4, %v2357_v2  ;;  %v2330_v8 = vor.u32 %v3051_v5, %v2327_v6  ;;  %v3059_v9 = vld [vmem:[#allocation2 + $0x264] sm:$0xf]  ;;  %v2359_v10 = vld [vmem:[#allocation2 + $0x270] sm:$0xf0] }
  0x13   : > { %v2309_v11 = vld [vmem:[#allocation2 + $0x200] sm:$0xf]  ;;  %541 = vmatpush.bf16.msra.mxu0 %v2326_v3  ;;  %v2362_v12 = vor.u32 %v3059_v9, %v2359_v10  ;;  %v3049_v13 = vld [vmem:[#allocation2 + $0x20c] sm:$0xf0]  ;;  %v3047_v18 = vld [vmem:[#allocation2 + $0x204] sm:$0xf] }
  0x14   : > { %s3317_s27 = scalar_lea.vmem %s3661_s0, %s3163_s24  ;;  %v2341_v14 = vld [vmem:[#allocation2 + $0x240] sm:$0xf]  ;;  %v3057_v15 = vld [vmem:[#allocation2 + $0x24c] sm:$0xf0]  ;;  %565 = vmatpush.bf16.msra.mxu1 %v2358_v7  ;;  %577 = vmatpush.bf16.msra.mxu2 %v2330_v8  ;;  %v2310_v16 = vor.u32 %v3049_v13, %v2309_v11  ;;  %v2311_v19 = vld [vmem:[#allocation2 + $0x210] sm:$0xf0] }
  0x15   : > { %v2342_v17 = vor.u32 %v3057_v15, %v2341_v14  ;;  %v3055_v20 = vld [vmem:[#allocation2 + $0x244] sm:$0xf]  ;;  %601 = vmatpush.bf16.msra.mxu3 %v2362_v12  ;;  %v2314_v21 = vor.u32 %v3047_v18, %v2311_v19  ;;  %v2343_v22 = vld [vmem:[#allocation2 + $0x250] sm:$0xf0]  ;;  %v3021_v23 = vld [vmem:[%s3317_s27 + $0x1c] sm:$0xf] }
  0x16   : > { %v2207_v24 = vld [vmem:[%s3317_s27 + $0x20] sm:$0xf0]  ;;  %v2346_v25 = vor.u32 %v3055_v20, %v2343_v22  ;;  %v2293_v26 = vld [vmem:[#allocation2 + $0x1e0] sm:$0xf]  ;;  %v3045_v27 = vld [vmem:[#allocation2 + $0x1ec] sm:$0xf0] }
  0x17   : > { %v3043_v28 = vld [vmem:[#allocation2 + $0x1e4] sm:$0xf]  ;;  %542 = vmatpush.bf16.msra.mxu0 %v2310_v16  ;;  %v3321_v29 = vor.u32 %v3021_v23, %v2207_v24  ;;  %v2294_v30 = vor.u32 %v3045_v27, %v2293_v26  ;;  %v2295_v31 = vld [vmem:[#allocation2 + $0x1f0] sm:$0xf0]  ;;  %v2333_v32 = vld [vmem:[#allocation2 + $0x228] sm:$0xf] }
  0x18   : > { %v3054_v33 = vld [vmem:[#allocation2 + $0x234] sm:$0xf0]  ;;  %566 = vmatpush.bf16.msra.mxu1 %v2342_v17  ;;  %578 = vmatpush.bf16.msra.mxu2 %v2314_v21  ;;  %v2298_v34 = vor.u32 %v3043_v28, %v2295_v31  ;;  %v2277_v36 = vld [vmem:[#allocation2 + $0x1c0] sm:$0xf]  ;;  %v3041_v37 = vld [vmem:[#allocation2 + $0x1cc] sm:$0xf0] }
  0x19   : > { %v2334_v35 = vor.u32 %v3054_v33, %v2333_v32  ;;  %v3039_v38 = vld [vmem:[#allocation2 + $0x1c4] sm:$0xf]  ;;  %602 = vmatpush.bf16.msra.mxu3 %v2346_v25  ;;  %v2279_v39 = vld [vmem:[#allocation2 + $0x1d0] sm:$0xf0]  ;;  %v2317_v40 = vld [vmem:[#allocation2 + $0x208] sm:$0xf]  ;;  %v2278_v43 = vor.u32 %v3041_v37, %v2277_v36 }
  0x1a   : > { %v3050_v41 = vld [vmem:[#allocation2 + $0x214] sm:$0xf0]  ;;  %v2301_v44 = vld [vmem:[#allocation2 + $0x1e8] sm:$0xf]  ;;  %v2282_v46 = vor.u32 %v3039_v38, %v2279_v39  ;;  %v2261_v47 = vld [vmem:[#allocation2 + $0x1a0] sm:$0xf] }
  0x1b   : > { %v2318_v42 = vor.u32 %v3050_v41, %v2317_v40  ;;  %2371 = vmatmul.msk.bf16.vlgmr.msra.gmra.mxu1 %vm534_vm0, %v3321_v29  ;;  %543 = vmatpush.bf16.msra.mxu0 %v2294_v30  ;;  %v3046_v45 = vld [vmem:[#allocation2 + $0x1f4] sm:$0xf0]  ;;  %v3037_v48 = vld [vmem:[#allocation2 + $0x1ac] sm:$0xf0]  ;;  %v3035_v49 = vld [vmem:[#allocation2 + $0x1a4] sm:$0xf] }
  0x1c   : > { %613 = vmatpush.bf16.msrb.mxu1 %v2334_v35  ;;  %2373 = vmatmul.msk.bf16.vlgmr.msra.gmra.mxu3 %vm534_vm0, %v3321_v29  ;;  %v2263_v50 = vld [vmem:[#allocation2 + $0x1b0] sm:$0xf0]  ;;  %v2302_v51 = vor.u32 %v3046_v45, %v2301_v44  ;;  %v2262_v52 = vor.u32 %v3037_v48, %v2261_v47  ;;  %v2285_v53 = vld [vmem:[#allocation2 + $0x1c8] sm:$0xf]  ;;  %v3042_v54 = vld [vmem:[#allocation2 + $0x1d4] sm:$0xf0] }
  0x1d   : > { %579 = vmatpush.bf16.msra.mxu2 %v2298_v34  ;;  %v2266_v55 = vor.u32 %v3035_v49, %v2263_v50  ;;  %v2245_v56 = vld [vmem:[#allocation2 + $0x180] sm:$0xf]  ;;  %v3033_v57 = vld [vmem:[#allocation2 + $0x18c] sm:$0xf0]  ;;  %v3328_v58 = vld [vmem:[%s3317_s27 + $0x28] sm:$0xff]  ;;  %v2286_v61 = vor.u32 %v3042_v54, %v2285_v53  ;;  %s3164_s10 = smul.u32 24, %s3670_s12 }
  0x1e   : > { %v3031_v59 = vld [vmem:[#allocation2 + $0x184] sm:$0xf]  ;;  %v2247_v60 = vld [vmem:[#allocation2 + $0x190] sm:$0xf0]  ;;  %v2246_v62 = vor.u32 %v3033_v57, %v2245_v56  ;;  %v327_v63 = vunpack.c.h.b16 %v3328_v58  ;;  %v2229_v0 = vld [vmem:[#allocation2 + $0x160] sm:$0xf] }
  0x1f   : > { %544 = vmatpush.bf16.msra.mxu0 %v2278_v43  ;;  %v2269_v1 = vld [vmem:[#allocation2 + $0x1a8] sm:$0xf]  ;;  %v3038_v2 = vld [vmem:[#allocation2 + $0x1b4] sm:$0xf0]  ;;  %v2250_v3 = vor.u32 %v3031_v59, %v2247_v60  ;;  %v3029_v4 = vld [vmem:[#allocation2 + $0x16c] sm:$0xf0]  ;;  %s228_s17 = scalar_lea.vmem %s3664_s3, %s3164_s10 }
  0x20   : > { %614 = vmatpush.bf16.msrb.mxu1 %v2318_v42  ;;  %v2365_v5 = vld [vmem:[#allocation2 + $0x268] sm:$0xf]  ;;  %v3062_v6 = vld [vmem:[#allocation2 + $0x274] sm:$0xf0]  ;;  %v3027_v7 = vld [vmem:[#allocation2 + $0x164] sm:$0xf]  ;;  %v2270_v10 = vor.u32 %v3038_v2, %v2269_v1  ;;  %v3331_v13 = vpack.c.b16 %v327_v63, %v327_v63  ;;  %v2230_v14 = vor.u32 %v3029_v4, %v2229_v0 }
  0x21   : > { %580 = vmatpush.bf16.msra.mxu2 %v2282_v46  ;;  %v2231_v8 = vld [vmem:[#allocation2 + $0x170] sm:$0xf0]  ;;  %v2366_v9 = vor.u32 %v3062_v6, %v2365_v5  ;;  %v2349_v11 = vld [vmem:[#allocation2 + $0x248] sm:$0xf]  ;;  %v3058_v12 = vld [vmem:[#allocation2 + $0x254] sm:$0xf0] }
  0x22   : > { %v2253_v15 = vld [vmem:[#allocation2 + $0x188] sm:$0xf]  ;;  %v3034_v16 = vld [vmem:[#allocation2 + $0x194] sm:$0xf0]  ;;  %v2234_v17 = vor.u32 %v3027_v7, %v2231_v8  ;;  %v2213_v18 = vld [vmem:[#allocation2 + $0x140] sm:$0xf]  ;;  %v2350_v24 = vor.u32 %v3058_v12, %v2349_v11  ;;  %v326_v8 = vunpack.c.l.b16 %v3328_v58 }
  0x23   : > { %545 = vmatpush.bf16.msra.mxu0 %v2262_v52  ;;  %637 = vmatpush.bf16.msrb.mxu3 %v2366_v9  ;;  %v3025_v19 = vld [vmem:[#allocation2 + $0x14c] sm:$0xf0]  ;;  %v3023_v20 = vld [vmem:[#allocation2 + $0x144] sm:$0xf]  ;;  %v2215_v21 = vld [vmem:[#allocation2 + $0x150] sm:$0xf0]  ;;  %v2254_v25 = vor.u32 %v3034_v16, %v2253_v15 }
  0x24   : > { %615 = vmatpush.bf16.msrb.mxu1 %v2302_v51  ;;  %v3052_v22 = vld [vmem:[#allocation2 + $0x22c] sm:$0xf]  ;;  %v2335_v23 = vld [vmem:[#allocation2 + $0x238] sm:$0xf0]  ;;  %v2205_v26 = vld [vmem:[%s3317_s27 + $0x18] sm:$0xf]  ;;  %v2214_v30 = vor.u32 %v3025_v19, %v2213_v18  ;;  %v2218_v34 = vor.u32 %v3023_v20, %v2215_v21  ;;  %v3347_v16 = vpack.c.b16 %v326_v8, %v326_v8 }
  0x25   : > { %581 = vmatpush.bf16.msra.mxu2 %v2266_v55  ;;  %v3060_v27 = vld [vmem:[#allocation2 + $0x26c] sm:$0xf]  ;;  %v2367_v28 = vld [vmem:[#allocation2 + $0x278] sm:$0xf0]  ;;  %v3022_v31 = vld [vmem:[%s3317_s27 + $0x1c] sm:$0xf0]  ;;  %v2338_v35 = vor.u32 %v3052_v22, %v2335_v23 }
  0x26   : > { %v2237_v32 = vld [vmem:[#allocation2 + $0x168] sm:$0xf]  ;;  %v3030_v33 = vld [vmem:[#allocation2 + $0x174] sm:$0xf0]  ;;  %v2370_v36 = vor.u32 %v3060_v27, %v2367_v28  ;;  %v3048_v37 = vld [vmem:[#allocation2 + $0x20c] sm:$0xf]  ;;  %v3339_v39 = vor.u32 %v3022_v31, %v2205_v26 }
  0x27   : > { %546 = vmatpush.bf16.msra.mxu0 %v2246_v62  ;;  %638 = vmatpush.bf16.msrb.mxu3 %v2350_v24  ;;  %v2319_v38 = vld [vmem:[#allocation2 + $0x218] sm:$0xf0]  ;;  %v2238_v40 = vor.u32 %v3030_v33, %v2237_v32  ;;  %v3056_v41 = vld [vmem:[#allocation2 + $0x24c] sm:$0xf]  ;;  %v2221_v43 = vld [vmem:[#allocation2 + $0x148] sm:$0xf] }
  0x28   : > { %616 = vmatpush.bf16.msrb.mxu1 %v2286_v61  ;;  %v2351_v42 = vld [vmem:[#allocation2 + $0x258] sm:$0xf0]  ;;  %v3026_v44 = vld [vmem:[#allocation2 + $0x154] sm:$0xf0]  ;;  %v2322_v45 = vor.u32 %v3048_v37, %v2319_v38  ;;  %v2501_v46 = vld [vmem:[#allocation2 + $0xe0] sm:$0xf] }
  0x29   : > { %582 = vmatpush.bf16.msra.mxu2 %v2250_v3  ;;  %v3011_v47 = vld [vmem:[#allocation2 + $0xec] sm:$0xf0]  ;;  %v3044_v48 = vld [vmem:[#allocation2 + $0x1ec] sm:$0xf]  ;;  %v2303_v49 = vld [vmem:[#allocation2 + $0x1f8] sm:$0xf0]  ;;  %v2354_v50 = vor.u32 %v3056_v41, %v2351_v42  ;;  %v2222_v51 = vor.u32 %v3026_v44, %v2221_v43 }
  0x2a   : > { %v2533_v52 = vld [vmem:[#allocation2 + $0x120] sm:$0xf]  ;;  %v2502_v53 = vor.u32 %v3011_v47, %v2501_v46  ;;  %v3017_v54 = vld [vmem:[#allocation2 + $0x124] sm:$0xf]  ;;  %v2535_v55 = vld [vmem:[#allocation2 + $0x130] sm:$0xf0]  ;;  %v2306_v57 = vor.u32 %v3044_v48, %v2303_v49 }
  0x2b   : > { %2372 = vmatmul.msk.bf16.gmra.mxu1 %vm534_vm0, %v3331_v13  ;;  %547 = vmatpush.bf16.msra.mxu0 %v2230_v14  ;;  %v3019_v56 = vld [vmem:[#allocation2 + $0x12c] sm:$0xf0]  ;;  %v3040_v59 = vld [vmem:[#allocation2 + $0x1cc] sm:$0xf]  ;;  %v2538_v60 = vor.u32 %v3017_v54, %v2535_v55  ;;  %v2287_v62 = vld [vmem:[#allocation2 + $0x1d8] sm:$0xf0] }
  0x2c   : > { %617 = vmatpush.bf16.msrb.mxu1 %v2270_v10  ;;  %2374 = vmatmul.msk.bf16.gmra.mxu3 %vm534_vm0, %v3331_v13  ;;  %v2534_v61 = vor.u32 %v3019_v56, %v2533_v52  ;;  %v2517_v63 = vld [vmem:[#allocation2 + $0x100] sm:$0xf]  ;;  %v3015_v0 = vld [vmem:[#allocation2 + $0x10c] sm:$0xf0]  ;;  %v2290_v4 = vor.u32 %v3040_v59, %v2287_v62  ;;  %v3036_v6 = vld [vmem:[#allocation2 + $0x1ac] sm:$0xf] }
  0x2d   : > { %583 = vmatpush.bf16.msra.mxu2 %v2234_v17  ;;  %v2485_v1 = vld [vmem:[#allocation2 + $0xc0] sm:$0xf]  ;;  %v3007_v2 = vld [vmem:[#allocation2 + $0xcc] sm:$0xf0]  ;;  %v2518_v3 = vor.u32 %v3015_v0, %v2517_v63  ;;  %v2271_v7 = vld [vmem:[#allocation2 + $0x1b8] sm:$0xf0] }
  0x2e   : > { %930 = vmatpush.bf16.msra.mxu3 %v2534_v61  ;;  %v2486_v5 = vor.u32 %v3007_v2, %v2485_v1  ;;  %v2469_v9 = vld [vmem:[#allocation2 + $0xa0] sm:$0xf]  ;;  %v3003_v10 = vld [vmem:[#allocation2 + $0xac] sm:$0xf0]  ;;  %v2274_v11 = vor.u32 %v3036_v6, %v2271_v7  ;;  %v3032_v14 = vld [vmem:[#allocation2 + $0x18c] sm:$0xf] }
  0x2f   : > { %548 = vmatpush.bf16.msra.mxu0 %v2214_v30  ;;  %v2470_v12 = vor.u32 %v3003_v10, %v2469_v9  ;;  %v2255_v15 = vld [vmem:[#allocation2 + $0x198] sm:$0xf0]  ;;  %v2453_v17 = vld [vmem:[#allocation2 + $0x80] sm:$0xf]  ;;  %v2999_v18 = vld [vmem:[#allocation2 + $0x8c] sm:$0xf0] }
  0x30   : > { %618 = vmatpush.bf16.msrb.mxu1 %v2254_v25  ;;  %v2258_v58 = vor.u32 %v3032_v14, %v2255_v15  ;;  %v2454_v19 = vor.u32 %v2999_v18, %v2453_v17  ;;  %v3028_v20 = vld [vmem:[#allocation2 + $0x16c] sm:$0xf]  ;;  %v2239_v21 = vld [vmem:[#allocation2 + $0x178] sm:$0xf0]  ;;  %v2437_v22 = vld [vmem:[#allocation2 + $0x60] sm:$0xf] }
  0x31   : > { %584 = vmatpush.bf16.msra.mxu2 %v2218_v34  ;;  %v2995_v23 = vld [vmem:[#allocation2 + $0x6c] sm:$0xf0]  ;;  %v3013_v24 = vld [vmem:[#allocation2 + $0x104] sm:$0xf]  ;;  %v2519_v25 = vld [vmem:[#allocation2 + $0x110] sm:$0xf0]  ;;  %v2242_v26 = vor.u32 %v3028_v20, %v2239_v21 }
  0x32   : > { %549 = vmatmul.bf16.vlgmr.msra.gmra.mxu0 %v3339_v39  ;;  %931 = vmatpush.bf16.msra.mxu3 %v2518_v3  ;;  %v2522_v27 = vor.u32 %v3013_v24, %v2519_v25  ;;  %v2438_v28 = vor.u32 %v2995_v23, %v2437_v22  ;;  %v3024_v30 = vld [vmem:[#allocation2 + $0x14c] sm:$0xf]  ;;  %v2223_v31 = vld [vmem:[#allocation2 + $0x158] sm:$0xf0]  ;;  %v2421_v32 = vld [vmem:[#allocation2 + $0x40] sm:$0xf] }
  0x33   : > { %649 = vmatpush.bf16.msrb.mxu0 %v2338_v35  ;;  %v2991_v33 = vld [vmem:[#allocation2 + $0x4c] sm:$0xf0]  ;;  %v3009_v34 = vld [vmem:[#allocation2 + $0xe4] sm:$0xf]  ;;  %v2503_v35 = vld [vmem:[#allocation2 + $0xf0] sm:$0xf0] }
  0x34   : > { %619 = vmatpush.bf16.msrb.mxu1 %v2238_v40  ;;  %585 = vmatmul.bf16.vlgmr.msra.gmra.mxu2 %v3339_v39  ;;  %v2422_v37 = vor.u32 %v2991_v33, %v2421_v32  ;;  %v2405_v38 = vld [vmem:[#allocation2 + $0x20] sm:$0xf]  ;;  %v2506_v40 = vor.u32 %v3009_v34, %v2503_v35  ;;  %v2987_v41 = vld [vmem:[#allocation2 + $0x2c] sm:$0xf0]  ;;  %v3005_v42 = vld [vmem:[#allocation2 + $0xc4] sm:$0xf] }
  0x35   : > { %673 = vmatpush.bf16.msrb.mxu2 %v2370_v36  ;;  %v2226_v36 = vor.u32 %v3024_v30, %v2223_v31  ;;  %v2487_v43 = vld [vmem:[#allocation2 + $0xd0] sm:$0xf0]  ;;  %v2406_v44 = vor.u32 %v2987_v41, %v2405_v38  ;;  %v2983_v47 = vld [vmem:[#allocation2 + $0xc] sm:$0xf0]  ;;  %v3001_v48 = vld [vmem:[#allocation2 + $0xa4] sm:$0xf] }
  0x36   : > { %v2490_v46 = vor.u32 %v3005_v42, %v2487_v43  ;;  %v2471_v49 = vld [vmem:[#allocation2 + $0xb0] sm:$0xf0]  ;;  %v2997_v54 = vld [vmem:[#allocation2 + $0x84] sm:$0xf]  ;;  %v3008_v59 = vld [vmem:[#allocation2 + $0xd4] sm:$0xf0] }
  0x37   : > { %650 = vmatpush.bf16.msrb.mxu0 %v2322_v45  ;;  %v2389_v45 = vld [vmem:[#allocation2] sm:$0xf]  ;;  %v2455_v55 = vld [vmem:[#allocation2 + $0x90] sm:$0xf0]  ;;  %v3018_v61 = vld [vmem:[#allocation2 + $0x12c] sm:$0xf] }
  0x38   : > { %620 = vmatpush.bf16.msrb.mxu1 %v2222_v51  ;;  %v3012_v51 = vld [vmem:[#allocation2 + $0xf4] sm:$0xf0]  ;;  %v2390_v52 = vor.u32 %v2983_v47, %v2389_v45  ;;  %v2543_v62 = vld [vmem:[#allocation2 + $0x138] sm:$0xf0]  ;;  %v2381_v0 = vld [vmem:[%s3317_s27] sm:$0xf]  ;;  %v2458_v6 = vor.u32 %v2997_v54, %v2455_v55 }
  0x39   : > { %674 = vmatpush.bf16.msrb.mxu2 %v2354_v50  ;;  %v2509_v50 = vld [vmem:[#allocation2 + $0xe8] sm:$0xf]  ;;  %v3020_v63 = vld [vmem:[#allocation2 + $0x134] sm:$0xf0]  ;;  %v2979_v2 = vld [vmem:[%s3317_s27 + $0x4] sm:$0xf]  ;;  %v2546_v3 = vor.u32 %v3018_v61, %v2543_v62 }
  0x3a   : > { %v2510_v56 = vor.u32 %v3012_v51, %v2509_v50  ;;  %v2980_v1 = vld [vmem:[%s3317_s27 + $0x4] sm:$0xf0]  ;;  %v3016_v7 = vld [vmem:[#allocation2 + $0x114] sm:$0xf0]  ;;  %v2993_v9 = vld [vmem:[#allocation2 + $0x64] sm:$0xf] }
  0x3b   : > { %651 = vmatpush.bf16.msrb.mxu0 %v2306_v57  ;;  %621 = vmatmul.bf16.vlgmr.msrb.gmra.mxu1 %v3339_v39  ;;  %v2493_v57 = vld [vmem:[#allocation2 + $0xc8] sm:$0xf]  ;;  %v2439_v10 = vld [vmem:[#allocation2 + $0x70] sm:$0xf0]  ;;  %v3000_v21 = vld [vmem:[#allocation2 + $0x94] sm:$0xf0] }
  0x3c   : > { %906 = vmatpush.bf16.msra.mxu1 %v2502_v53  ;;  %2375 = vmatmul.msk.bf16.vlgmr.msrb.gmra.mxu3 %vm534_vm0, %v3321_v29  ;;  %v2474_v53 = vor.u32 %v3001_v48, %v2471_v49  ;;  %v2494_v8 = vor.u32 %v3008_v59, %v2493_v57  ;;  %v2442_v17 = vor.u32 %v2993_v9, %v2439_v10  ;;  %v2461_v20 = vld [vmem:[#allocation2 + $0x88] sm:$0xf]  ;;  %v2985_v24 = vld [vmem:[#allocation2 + $0x24] sm:$0xf]  ;;  %v2407_v25 = vld [vmem:[#allocation2 + $0x30] sm:$0xf0] }
  0x3d   : > { %966 = vmatpush.bf16.msra.mxu2 %v2538_v60  ;;  %v2541_v60 = vld [vmem:[#allocation2 + $0x128] sm:$0xf]  ;;  %v2462_v23 = vor.u32 %v3000_v21, %v2461_v20  ;;  %v2410_v30 = vor.u32 %v2985_v24, %v2407_v25  ;;  %v2981_v31 = vld [vmem:[#allocation2 + $0x4] sm:$0xf]  ;;  %v2391_v32 = vld [vmem:[#allocation2 + $0x10] sm:$0xf0] }
  0x3e   : > { %v2429_v34 = vld [vmem:[#allocation2 + $0x48] sm:$0xf]  ;;  %v2992_v35 = vld [vmem:[#allocation2 + $0x54] sm:$0xf0]  ;;  %v2511_v38 = vld [vmem:[#allocation2 + $0xf8] sm:$0xf0] }
  0x3f   : > { %652 = vmatpush.bf16.msrb.mxu0 %v2290_v4  ;;  %v2542_v4 = vor.u32 %v3020_v63, %v2541_v60  ;;  %v2527_v41 = vld [vmem:[#allocation2 + $0x118] sm:$0xf0]  ;;  %v2430_v45 = vor.u32 %v2992_v35, %v2429_v34  ;;  %v2988_v48 = vld [vmem:[#allocation2 + $0x34] sm:$0xf0]  ;;  %v3006_v49 = vld [vmem:[#allocation2 + $0xcc] sm:$0xf] }
  0x40   : > { %907 = vmatpush.bf16.msra.mxu1 %v2486_v5  ;;  %v2383_v5 = vld [vmem:[%s3317_s27 + $0x8] sm:$0xf0]  ;;  %v2495_v50 = vld [vmem:[#allocation2 + $0xd8] sm:$0xf0]  ;;  %v2984_v54 = vld [vmem:[#allocation2 + $0x14] sm:$0xf0] }
  0x41   : > { %967 = vmatpush.bf16.msra.mxu2 %v2522_v27  ;;  %1002 = vmatpush.bf16.msrb.mxu3 %v2542_v4  ;;  %v3363_v15 = vor.u32 %v2979_v2, %v2383_v5  ;;  %v2996_v27 = vld [vmem:[#allocation2 + $0x74] sm:$0xf0]  ;;  %v3002_v55 = vld [vmem:[#allocation2 + $0xac] sm:$0xf]  ;;  %v2680_v57 = vld [vmem:[#allocation2 + $0x360] sm:$0xf] }
  0x42   : > { %554 = vmatmul.bf16.gmra.mxu0 %v3347_v16  ;;  %v3095_v59 = vld [vmem:[#allocation2 + $0x36c] sm:$0xf0]  ;;  %v2998_v62 = vld [vmem:[#allocation2 + $0x8c] sm:$0xf]  ;;  %v2463_v63 = vld [vmem:[#allocation2 + $0x98] sm:$0xf0] }
  0x43   : > { %653 = vmatpush.bf16.msrb.mxu0 %v2274_v11  ;;  %v2477_v11 = vld [vmem:[#allocation2 + $0xa8] sm:$0xf]  ;;  %v3091_v2 = vld [vmem:[#allocation2 + $0x34c] sm:$0xf0]  ;;  %v2466_v5 = vor.u32 %v2998_v62, %v2463_v63  ;;  %v2447_v9 = vld [vmem:[#allocation2 + $0x78] sm:$0xf0] }
  0x44   : > { %908 = vmatpush.bf16.msra.mxu1 %v2470_v12  ;;  %590 = vmatmul.bf16.gmra.mxu2 %v3347_v16  ;;  %v3004_v12 = vld [vmem:[#allocation2 + $0xb4] sm:$0xf0]  ;;  %v3103_v4 = vld [vmem:[#allocation2 + $0x3ac] sm:$0xf0]  ;;  %v2990_v20 = vld [vmem:[#allocation2 + $0x4c] sm:$0xf] }
  0x45   : > { %v2478_v18 = vor.u32 %v3004_v12, %v2477_v11  ;;  %v2648_v12 = vld [vmem:[#allocation2 + $0x320] sm:$0xf]  ;;  %v2431_v21 = vld [vmem:[#allocation2 + $0x58] sm:$0xf0]  ;;  %v3083_v24 = vld [vmem:[#allocation2 + $0x30c] sm:$0xf0] }
  0x46   : > { %v2434_v25 = vor.u32 %v2990_v20, %v2431_v21  ;;  %v2399_v34 = vld [vmem:[#allocation2 + $0x18] sm:$0xf0]  ;;  %v3081_v62 = vld [vmem:[#allocation2 + $0x304] sm:$0xf]  ;;  %v2634_v63 = vld [vmem:[#allocation2 + $0x310] sm:$0xf0] }
  0x47   : > { %654 = vmatpush.bf16.msrb.mxu0 %v2258_v58  ;;  %v2989_v58 = vld [vmem:[#allocation2 + $0x44] sm:$0xf]  ;;  %v2602_v21 = vld [vmem:[#allocation2 + $0x2d0] sm:$0xf0] }
  0x48   : > { %909 = vmatpush.bf16.msra.mxu1 %v2454_v19  ;;  %v2423_v19 = vld [vmem:[#allocation2 + $0x50] sm:$0xf0]  ;;  %v3073_v20 = vld [vmem:[#allocation2 + $0x2c4] sm:$0xf] }
  0x49   : > { %v2426_v22 = vor.u32 %v2989_v58, %v2423_v19 }
  0x4b   : > { %655 = vmatpush.bf16.msrb.mxu0 %v2242_v26  ;;  %626 = vmatmul.bf16.gmra.mxu1 %v3347_v16  ;;  %v2445_v26 = vld [vmem:[#allocation2 + $0x68] sm:$0xf] }
  0x4c   : > { %910 = vmatpush.bf16.msra.mxu1 %v2438_v28  ;;  %2376 = vmatmul.msk.bf16.gmra.mxu3 %vm534_vm0, %v3331_v13  ;;  %v233_v28 = vld [vmem:[%s3317_s27 + $0x10] sm:$0xff]  ;;  %v2446_v33 = vor.u32 %v2996_v27, %v2445_v26  ;;  %v2986_v26 = vld [vmem:[#allocation2 + $0x2c] sm:$0xf]  ;;  %v2415_v27 = vld [vmem:[#allocation2 + $0x38] sm:$0xf0] }
  0x4d   : > { %v693_v42 = vunpack.c.h.b16 %v233_v28 }
  0x4f   : > { %656 = vmatpush.bf16.msrb.mxu0 %v2226_v36  ;;  %v3010_v36 = vld [vmem:[#allocation2 + $0xec] sm:$0xf]  ;;  %v3374_v51 = vpack.c.b16 %v693_v42, %v693_v42  ;;  %v3097_v42 = vld [vmem:[#allocation2 + $0x384] sm:$0xf] }
  0x50   : > { %911 = vmatpush.bf16.msra.mxu1 %v2422_v37  ;;  %v692_v37 = vunpack.c.l.b16 %v233_v28 }
  0x52   : > { %657 = vmatmul.bf16.vlgmr.msrb.gmra.mxu0 %v3339_v39  ;;  %v2525_v39 = vld [vmem:[#allocation2 + $0x108] sm:$0xf]  ;;  %v3372_v47 = vpack.c.b16 %v692_v37, %v692_v37  ;;  %v2682_v37 = vld [vmem:[#allocation2 + $0x370] sm:$0xf0] }
  0x53   : > { %942 = vmatpush.bf16.msra.mxu0 %v2506_v40  ;;  %v2526_v14 = vor.u32 %v3016_v7, %v2525_v39  ;;  %v3014_v40 = vld [vmem:[#allocation2 + $0x10c] sm:$0xf]  ;;  %v2714_v39 = vld [vmem:[#allocation2 + $0x3b0] sm:$0xf0] }
  0x54   : > { %912 = vmatpush.bf16.msra.mxu1 %v2406_v44  ;;  %2377 = vmatmul.msk.bf16.vlgmr.msrb.gmra.mxu2 %vm534_vm0, %v3321_v29  ;;  %v3361_v29 = vor.u32 %v2980_v1, %v2381_v0  ;;  %v2530_v43 = vor.u32 %v3014_v40, %v2527_v41  ;;  %v2394_v44 = vor.u32 %v2981_v31, %v2391_v32  ;;  %v2664_v1 = vld [vmem:[#allocation2 + $0x340] sm:$0xf]  ;;  %v3079_v31 = vld [vmem:[#allocation2 + $0x2ec] sm:$0xf0] }
  0x55   : > { %1038 = vmatpush.bf16.msrb.mxu2 %v2546_v3  ;;  %1003 = vmatpush.bf16.msrb.mxu3 %v2526_v14  ;;  %v2681_v0 = vor.u32 %v3095_v59, %v2680_v57  ;;  %v2712_v3 = vld [vmem:[#allocation2 + $0x3a0] sm:$0xf]  ;;  %v2665_v10 = vor.u32 %v3091_v2, %v2664_v1  ;;  %v3087_v14 = vld [vmem:[#allocation2 + $0x32c] sm:$0xf0]  ;;  %v2418_v32 = vor.u32 %v2986_v26, %v2415_v27  ;;  %v2688_v57 = vld [vmem:[#allocation2 + $0x368] sm:$0xf] }
  0x56   : > { %v2713_v7 = vor.u32 %v3103_v4, %v2712_v3  ;;  %v3075_v40 = vld [vmem:[#allocation2 + $0x2cc] sm:$0xf0]  ;;  %v3096_v59 = vld [vmem:[#allocation2 + $0x374] sm:$0xf0]  ;;  %v2672_v1 = vld [vmem:[#allocation2 + $0x348] sm:$0xf]  ;;  %v2637_v3 = vor.u32 %v3081_v62, %v2634_v63 }
  0x57   : > { %943 = vmatpush.bf16.msra.mxu0 %v2490_v46  ;;  %v2413_v46 = vld [vmem:[#allocation2 + $0x28] sm:$0xf]  ;;  %v3092_v2 = vld [vmem:[#allocation2 + $0x354] sm:$0xf0]  ;;  %v3077_v4 = vld [vmem:[#allocation2 + $0x2e4] sm:$0xf] }
  0x58   : > { %913 = vmatpush.bf16.msra.mxu1 %v2390_v52  ;;  %v2498_v52 = vor.u32 %v3006_v49, %v2495_v50  ;;  %v2584_v49 = vld [vmem:[#allocation2 + $0x2a0] sm:$0xf]  ;;  %v3071_v50 = vld [vmem:[#allocation2 + $0x2ac] sm:$0xf0]  ;;  %v3084_v26 = vld [vmem:[#allocation2 + $0x314] sm:$0xf0] }
  0x59   : > { %1039 = vmatpush.bf16.msrb.mxu2 %v2530_v43  ;;  %v2698_v43 = vld [vmem:[#allocation2 + $0x390] sm:$0xf0] }
  0x5b   : > { %944 = vmatpush.bf16.msra.mxu0 %v2474_v53  ;;  %914 = vmatmul.bf16.vlgmr.msra.gmra.mxu1 %v3361_v29  ;;  %v2397_v53 = vld [vmem:[#allocation2 + $0x8] sm:$0xf] }
  0x5c   : > { %978 = vmatpush.bf16.msrb.mxu1 %v2510_v56  ;;  %2547 = vmatmul.msk.bf16.vlgmr.msra.gmra.mxu3 %vm534_vm0, %v3363_v15  ;;  %v2479_v56 = vld [vmem:[#allocation2 + $0xb8] sm:$0xf0]  ;;  %v2398_v60 = vor.u32 %v2984_v54, %v2397_v53  ;;  %v3085_v53 = vld [vmem:[#allocation2 + $0x324] sm:$0xf]  ;;  %v2650_v54 = vld [vmem:[#allocation2 + $0x330] sm:$0xf0] }
  0x5d   : > { %v2482_v61 = vor.u32 %v3002_v55, %v2479_v56  ;;  %1340 = vmatpush.bf16.msra.mxu3 %v2713_v7  ;;  %v2568_v55 = vld [vmem:[#allocation2 + $0x280] sm:$0xf]  ;;  %v3067_v56 = vld [vmem:[#allocation2 + $0x28c] sm:$0xf0]  ;;  %v2720_v7 = vld [vmem:[#allocation2 + $0x3a8] sm:$0xf] }
  0x5f   : > { %945 = vmatpush.bf16.msra.mxu0 %v2458_v6  ;;  %v3101_v6 = vld [vmem:[#allocation2 + $0x3a4] sm:$0xf] }
  0x60   : > { %979 = vmatpush.bf16.msrb.mxu1 %v2494_v8  ;;  %v2994_v8 = vld [vmem:[#allocation2 + $0x6c] sm:$0xf]  ;;  %v2717_v11 = vor.u32 %v3101_v6, %v2714_v39  ;;  %v2673_v6 = vor.u32 %v3092_v2, %v2672_v1  ;;  %v2656_v39 = vld [vmem:[#allocation2 + $0x328] sm:$0xf] }
  0x61   : > { %v2450_v58 = vor.u32 %v2994_v8, %v2447_v9  ;;  %v3104_v8 = vld [vmem:[#allocation2 + $0x3b4] sm:$0xf0] }
  0x62   : > { %662 = vmatmul.bf16.gmra.mxu0 %v3347_v16  ;;  %v2514_v16 = vor.u32 %v3010_v36, %v2511_v38  ;;  %v3093_v36 = vld [vmem:[#allocation2 + $0x364] sm:$0xf]  ;;  %v2600_v38 = vld [vmem:[#allocation2 + $0x2c0] sm:$0xf]  ;;  %v3088_v9 = vld [vmem:[#allocation2 + $0x334] sm:$0xf0] }
  0x63   : > { %946 = vmatpush.bf16.msra.mxu0 %v2442_v17  ;;  %v2696_v17 = vld [vmem:[#allocation2 + $0x380] sm:$0xf] }
  0x64   : > { %980 = vmatpush.bf16.msrb.mxu1 %v2478_v18  ;;  %2378 = vmatmul.msk.bf16.gmra.mxu2 %vm534_vm0, %v3331_v13  ;;  %v2414_v13 = vor.u32 %v2988_v48, %v2413_v46  ;;  %v3099_v18 = vld [vmem:[#allocation2 + $0x38c] sm:$0xf0]  ;;  %v2701_v46 = vor.u32 %v3097_v42, %v2698_v43  ;;  %v2666_v48 = vld [vmem:[#allocation2 + $0x350] sm:$0xf0]  ;;  %v3094_v42 = vld [vmem:[#allocation2 + $0x36c] sm:$0xf] }
  0x65   : > { %v2697_v19 = vor.u32 %v3099_v18, %v2696_v17  ;;  %v2560_v17 = vld [vmem:[%s3317_s27 + $0x30] sm:$0xf]  ;;  %v3064_v18 = vld [vmem:[%s3317_s27 + $0x34] sm:$0xf0]  ;;  %v2690_v43 = vld [vmem:[#allocation2 + $0x378] sm:$0xf0] }
  0x67   : > { %947 = vmatpush.bf16.msra.mxu0 %v2426_v22  ;;  %v2649_v22 = vor.u32 %v3087_v14, %v2648_v12  ;;  %1341 = vmatpush.bf16.msra.mxu3 %v2697_v19  ;;  %v2721_v12 = vor.u32 %v3104_v8, %v2720_v7  ;;  %v3063_v14 = vld [vmem:[%s3317_s27 + $0x34] sm:$0xf] }
  0x68   : > { %981 = vmatpush.bf16.msrb.mxu1 %v2462_v23  ;;  %v2632_v23 = vld [vmem:[#allocation2 + $0x300] sm:$0xf] }
  0x69   : > { %v2633_v28 = vor.u32 %v3083_v24, %v2632_v23  ;;  %v2704_v23 = vld [vmem:[#allocation2 + $0x388] sm:$0xf]  ;;  %v3100_v24 = vld [vmem:[#allocation2 + $0x394] sm:$0xf0] }
  0x6a   : > { %v2705_v27 = vor.u32 %v3100_v24, %v2704_v23  ;;  %v2827_v23 = vld [vmem:[#allocation2 + $0x460] sm:$0xf]  ;;  %v3129_v24 = vld [vmem:[#allocation2 + $0x46c] sm:$0xf0] }
  0x6b   : > { %948 = vmatpush.bf16.msra.mxu0 %v2410_v30  ;;  %919 = vmatmul.bf16.gmra.mxu1 %v3372_v47  ;;  %v2616_v30 = vld [vmem:[#allocation2 + $0x2e0] sm:$0xf] }
  0x6c   : > { %982 = vmatpush.bf16.msrb.mxu1 %v2446_v33  ;;  %2548 = vmatmul.msk.bf16.gmra.mxu3 %vm534_vm0, %v3374_v51  ;;  %v2982_v33 = vld [vmem:[#allocation2 + $0xc] sm:$0xf]  ;;  %v2617_v35 = vor.u32 %v3079_v31, %v2616_v30  ;;  %v2605_v31 = vor.u32 %v3073_v20, %v2602_v21 }
  0x6d   : > { %v2402_v41 = vor.u32 %v2982_v33, %v2399_v34  ;;  %v2586_v33 = vld [vmem:[#allocation2 + $0x2b0] sm:$0xf0] }
  0x6f   : > { %949 = vmatpush.bf16.msra.mxu0 %v2394_v44  ;;  %v2685_v44 = vor.u32 %v3093_v36, %v2682_v37  ;;  %v3080_v36 = vld [vmem:[#allocation2 + $0x2f4] sm:$0xf0] }
  0x70   : > { %983 = vmatpush.bf16.msrb.mxu1 %v2430_v45  ;;  %v2601_v45 = vor.u32 %v3075_v40, %v2600_v38  ;;  %v3065_v38 = vld [vmem:[#allocation2 + $0x284] sm:$0xf]  ;;  %v2570_v40 = vld [vmem:[#allocation2 + $0x290] sm:$0xf0] }
  0x72   : > { %950 = vmatmul.bf16.vlgmr.msra.gmra.mxu0 %v3361_v29 }
  0x73   : > { %1014 = vmatpush.bf16.msrb.mxu0 %v2514_v16  ;;  %v3089_v16 = vld [vmem:[#allocation2 + $0x344] sm:$0xf] }
  0x74   : > { %984 = vmatpush.bf16.msrb.mxu1 %v2414_v13  ;;  %2549 = vmatmul.msk.bf16.vlgmr.msra.gmra.mxu2 %vm534_vm0, %v3363_v15  ;;  %v2669_v13 = vor.u32 %v3089_v16, %v2666_v48  ;;  %v2573_v48 = vor.u32 %v3065_v38, %v2570_v40  ;;  %v3070_v38 = vld [vmem:[#allocation2 + $0x2ac] sm:$0xf]  ;;  %v2811_v40 = vld [vmem:[#allocation2 + $0x440] sm:$0xf] }
  0x75   : > { %1376 = vmatpush.bf16.msra.mxu2 %v2717_v11  ;;  %v2722_v11 = vld [vmem:[#allocation2 + $0x3b8] sm:$0xf0] }
  0x77   : > { %1015 = vmatpush.bf16.msrb.mxu0 %v2498_v52  ;;  %v2585_v52 = vor.u32 %v3071_v50, %v2584_v49  ;;  %v2557_v49 = vld [vmem:[%s3317_s27 + $0x40] sm:$0xff]  ;;  %v2693_v50 = vor.u32 %v3094_v42, %v2690_v43  ;;  %v2594_v43 = vld [vmem:[#allocation2 + $0x2b8] sm:$0xf0] }
  0x78   : > { %985 = vmatpush.bf16.msrb.mxu1 %v2398_v60  ;;  %v2653_v60 = vor.u32 %v3085_v53, %v2650_v54  ;;  %v2674_v53 = vld [vmem:[#allocation2 + $0x358] sm:$0xf0]  ;;  %v2592_v54 = vld [vmem:[#allocation2 + $0x2a8] sm:$0xf] }
  0x79   : > { %1377 = vmatpush.bf16.msra.mxu2 %v2701_v46  ;;  %v3076_v46 = vld [vmem:[#allocation2 + $0x2d4] sm:$0xf0] }
  0x7b   : > { %1016 = vmatpush.bf16.msrb.mxu0 %v2482_v61  ;;  %986 = vmatmul.bf16.vlgmr.msrb.gmra.mxu1 %v3361_v29  ;;  %v2569_v61 = vor.u32 %v3067_v56, %v2568_v55  ;;  %v1102_v55 = vunpack.c.l.b16 %v2557_v49  ;;  %v3072_v56 = vld [vmem:[#allocation2 + $0x2b4] sm:$0xf0] }
  0x7c   : > { %1316 = vmatpush.bf16.msra.mxu1 %v2681_v0  ;;  %2551 = vmatmul.msk.bf16.vlgmr.msrb.gmra.mxu3 %vm534_vm0, %v3363_v15  ;;  %v2689_v0 = vor.u32 %v3096_v59, %v2688_v57  ;;  %v3098_v57 = vld [vmem:[#allocation2 + $0x38c] sm:$0xf]  ;;  %v2706_v59 = vld [vmem:[#allocation2 + $0x398] sm:$0xf0]  ;;  %v2593_v63 = vor.u32 %v3072_v56, %v2592_v54  ;;  %v2795_v56 = vld [vmem:[#allocation2 + $0x420] sm:$0xf] }
  0x7d   : > { %1412 = vmatpush.bf16.msrb.mxu3 %v2721_v12  ;;  %v3417_v2 = vpack.c.b16 %v1102_v55, %v1102_v55  ;;  %v2843_v12 = vld [vmem:[#allocation2 + $0x480] sm:$0xf]  ;;  %v2597_v55 = vor.u32 %v3070_v38, %v2594_v43  ;;  %v2813_v38 = vld [vmem:[#allocation2 + $0x450] sm:$0xf0] }
  0x7f   : > { %1017 = vmatpush.bf16.msrb.mxu0 %v2466_v5  ;;  %v2618_v5 = vld [vmem:[#allocation2 + $0x2f0] sm:$0xf0] }
  0x80   : > { %1317 = vmatpush.bf16.msra.mxu1 %v2665_v10  ;;  %v3102_v10 = vld [vmem:[#allocation2 + $0x3ac] sm:$0xf] }
  0x81   : > { %v2725_v19 = vor.u32 %v3102_v10, %v2722_v11  ;;  %1413 = vmatpush.bf16.msrb.mxu3 %v2705_v27  ;;  %v2642_v10 = vld [vmem:[#allocation2 + $0x318] sm:$0xf0] }
  0x82   : > { %955 = vmatmul.bf16.gmra.mxu0 %v3372_v47  ;;  %v2610_v27 = vld [vmem:[#allocation2 + $0x2d8] sm:$0xf0] }
  0x83   : > { %1018 = vmatpush.bf16.msrb.mxu0 %v2450_v58  ;;  %v2621_v58 = vor.u32 %v3077_v4, %v2618_v5 }
  0x84   : > { %1318 = vmatpush.bf16.msra.mxu1 %v2649_v22  ;;  %2550 = vmatmul.msk.bf16.gmra.mxu2 %vm534_vm0, %v3374_v51  ;;  %v2657_v22 = vor.u32 %v3088_v9, %v2656_v39  ;;  %v3137_v39 = vld [vmem:[#allocation2 + $0x4ac] sm:$0xf0]  ;;  %v3082_v9 = vld [vmem:[#allocation2 + $0x30c] sm:$0xf] }
  0x87   : > { %1019 = vmatpush.bf16.msrb.mxu0 %v2434_v25  ;;  %v2640_v25 = vld [vmem:[#allocation2 + $0x308] sm:$0xf] }
  0x88   : > { %1319 = vmatpush.bf16.msra.mxu1 %v2633_v28  ;;  %v2641_v34 = vor.u32 %v3084_v26, %v2640_v25  ;;  %v3074_v26 = vld [vmem:[#allocation2 + $0x2cc] sm:$0xf] }
  0x8b   : > { %1020 = vmatpush.bf16.msrb.mxu0 %v2418_v32  ;;  %991 = vmatmul.bf16.gmra.mxu1 %v3372_v47  ;;  %v3069_v32 = vld [vmem:[#allocation2 + $0x2a4] sm:$0xf] }
  0x8c   : > { %1320 = vmatpush.bf16.msra.mxu1 %v2617_v35  ;;  %2552 = vmatmul.msk.bf16.gmra.mxu3 %vm534_vm0, %v3374_v51  ;;  %v2624_v35 = vld [vmem:[#allocation2 + $0x2e8] sm:$0xf]  ;;  %v2589_v37 = vor.u32 %v3069_v32, %v2586_v33  ;;  %v3145_v32 = vld [vmem:[#allocation2 + $0x4ec] sm:$0xf0]  ;;  %v2828_v33 = vor.u32 %v3129_v24, %v2827_v23  ;;  %v2747_v23 = vld [vmem:[#allocation2 + $0x3c0] sm:$0xf] }
  0x8d   : > { %v3109_v24 = vld [vmem:[#allocation2 + $0x3cc] sm:$0xf0] }
  0x8f   : > { %1021 = vmatpush.bf16.msrb.mxu0 %v2402_v41  ;;  %v2625_v41 = vor.u32 %v3080_v36, %v2624_v35  ;;  %v2893_v35 = vld [vmem:[#allocation2 + $0x4f0] sm:$0xf0] }
  0x90   : > { %1321 = vmatpush.bf16.msra.mxu1 %v2601_v45  ;;  %v2608_v45 = vld [vmem:[#allocation2 + $0x2c8] sm:$0xf] }
  0x92   : > { %1022 = vmatmul.bf16.vlgmr.msrb.gmra.mxu0 %v3361_v29  ;;  %v2562_v29 = vld [vmem:[%s3317_s27 + $0x38] sm:$0xf0] }
  0x93   : > { %1352 = vmatpush.bf16.msra.mxu0 %v2685_v44  ;;  %v3402_v30 = vor.u32 %v3063_v14, %v2562_v29  ;;  %v3133_v14 = vld [vmem:[#allocation2 + $0x48c] sm:$0xf0] }
  0x94   : > { %1322 = vmatpush.bf16.msra.mxu1 %v2585_v52  ;;  %2553 = vmatmul.msk.bf16.vlgmr.msrb.gmra.mxu2 %vm534_vm0, %v3363_v15  ;;  %v3398_v15 = vor.u32 %v3064_v18, %v2560_v17  ;;  %v3090_v52 = vld [vmem:[#allocation2 + $0x34c] sm:$0xf]  ;;  %v2645_v17 = vor.u32 %v3082_v9, %v2642_v10  ;;  %v2844_v20 = vor.u32 %v3133_v14, %v2843_v12  ;;  %v2845_v12 = vld [vmem:[#allocation2 + $0x490] sm:$0xf0]  ;;  %v2763_v14 = vld [vmem:[#allocation2 + $0x3e0] sm:$0xf] }
  0x95   : > { %1448 = vmatpush.bf16.msrb.mxu2 %v2725_v19  ;;  %v2677_v62 = vor.u32 %v3090_v52, %v2674_v53  ;;  %v3078_v18 = vld [vmem:[#allocation2 + $0x2ec] sm:$0xf] }
  0x97   : > { %1353 = vmatpush.bf16.msra.mxu0 %v2669_v13  ;;  %v2609_v13 = vor.u32 %v3076_v46, %v2608_v45  ;;  %v2875_v45 = vld [vmem:[#allocation2 + $0x4c0] sm:$0xf]  ;;  %v3141_v46 = vld [vmem:[#allocation2 + $0x4cc] sm:$0xf0] }
  0x98   : > { %1323 = vmatpush.bf16.msra.mxu1 %v2569_v61  ;;  %v3400_v28 = vpop.f32.mrf.mxu1  ;;  %v2709_v61 = vor.u32 %v3098_v57, %v2706_v59  ;;  %v3121_v57 = vld [vmem:[#allocation2 + $0x42c] sm:$0xf0]  ;;  %v3066_v59 = vld [vmem:[#allocation2 + $0x28c] sm:$0xf] }
  0x9a   : > { %1449 = vmatpush.bf16.msrb.mxu2 %v2709_v61  ;;  %v3135_v61 = vld [vmem:[#allocation2 + $0x4a4] sm:$0xf] }
  0x9b   : > { %1354 = vmatpush.bf16.msra.mxu0 %v2653_v60  ;;  %1324 = vmatmul.bf16.vlgmr.msra.gmra.mxu1 %v3398_v15  ;;  %v1103_v60 = vunpack.c.h.b16 %v2557_v49 }
  0x9c   : > { %1388 = vmatpush.bf16.msrb.mxu1 %v2689_v0  ;;  %2726 = vmatmul.msk.bf16.vlgmr.msra.gmra.mxu3 %vm534_vm0, %v3402_v30  ;;  %v2658_v0 = vld [vmem:[#allocation2 + $0x338] sm:$0xf0] }
  0x9d   : > { %v3421_v5 = vpack.c.b16 %v1103_v60, %v1103_v60  ;;  %v2578_v60 = vld [vmem:[#allocation2 + $0x298] sm:$0xf0] }
  0x9f   : > { %1355 = vmatpush.bf16.msra.mxu0 %v2637_v3  ;;  %v3407_v44 = vpop.f32.mrf.mxu3  ;;  %v2576_v3 = vld [vmem:[#allocation2 + $0x288] sm:$0xf] }
  0xa0   : > { %1389 = vmatpush.bf16.msrb.mxu1 %v2673_v6  ;;  %v3409_v16 = vpop.f32.mrf.mxu1  ;;  %v2859_v6 = vld [vmem:[#allocation2 + $0x4a0] sm:$0xf] }
  0xa1   : > { %v2860_v11 = vor.u32 %v3137_v39, %v2859_v6 }
  0xa2   : > { %1027 = vmatmul.bf16.gmra.mxu0 %v3372_v47  ;;  %v3086_v47 = vld [vmem:[#allocation2 + $0x32c] sm:$0xf] }
  0xa3   : > { %1356 = vmatpush.bf16.msra.mxu0 %v2621_v58  ;;  %v2661_v7 = vor.u32 %v3086_v47, %v2658_v0  ;;  %v2626_v58 = vld [vmem:[#allocation2 + $0x2f8] sm:$0xf0]  ;;  %v3117_v47 = vld [vmem:[#allocation2 + $0x40c] sm:$0xf0] }
  0xa4   : > { %1390 = vmatpush.bf16.msrb.mxu1 %v2657_v22  ;;  %2554 = vmatmul.msk.bf16.gmra.mxu2 %vm534_vm0, %v3374_v51  ;;  %v3068_v51 = vld [vmem:[#allocation2 + $0x294] sm:$0xf0]  ;;  %v2629_v25 = vor.u32 %v3078_v18, %v2626_v58  ;;  %v3139_v18 = vld [vmem:[#allocation2 + $0x4c4] sm:$0xf]  ;;  %v2877_v58 = vld [vmem:[#allocation2 + $0x4d0] sm:$0xf0] }
  0xa5   : > { %v2577_v8 = vor.u32 %v3068_v51, %v2576_v3 }
  0xa7   : > { %1357 = vmatpush.bf16.msra.mxu0 %v2605_v31  ;;  %v3415_v1 = vpop.f32.mrf.mxu3  ;;  %v2891_v31 = vld [vmem:[#allocation2 + $0x4e0] sm:$0xf] }
  0xa8   : > { %1391 = vmatpush.bf16.msrb.mxu1 %v2641_v34  ;;  %v3419_v4 = vpop.f32.mrf.mxu1  ;;  %v3143_v34 = vld [vmem:[#allocation2 + $0x4e4] sm:$0xf] }
  0xa9   : > { %v2896_v36 = vor.u32 %v3143_v34, %v2893_v35 }
  0xab   : > { %1358 = vmatpush.bf16.msra.mxu0 %v2589_v37  ;;  %1329 = vmatmul.bf16.gmra.mxu1 %v3417_v2  ;;  %v2613_v37 = vor.u32 %v3074_v26, %v2610_v27  ;;  %v2867_v26 = vld [vmem:[#allocation2 + $0x4a8] sm:$0xf]  ;;  %v3138_v27 = vld [vmem:[#allocation2 + $0x4b4] sm:$0xf0] }
  0xac   : > { %1392 = vmatpush.bf16.msrb.mxu1 %v2625_v41  ;;  %2727 = vmatmul.msk.bf16.gmra.mxu3 %vm534_vm0, %v3421_v5  ;;  %v3125_v41 = vld [vmem:[#allocation2 + $0x44c] sm:$0xf0] }
  0xad   : > { %v2812_v54 = vor.u32 %v3125_v41, %v2811_v40  ;;  %v2868_v40 = vor.u32 %v3138_v27, %v2867_v26  ;;  %v2851_v41 = vld [vmem:[#allocation2 + $0x488] sm:$0xf] }
  0xaf   : > { %1359 = vmatpush.bf16.msra.mxu0 %v2573_v48  ;;  %v3426_v19 = vpop.f32.mrf.mxu3  ;;  %v550_v29 = vpop.f32.mrf.mxu0 }
  0xb0   : > { %1393 = vmatpush.bf16.msrb.mxu1 %v2609_v13  ;;  %v3429_v21 = vadd.f32 %v3400_v28, %v550_v29  ;;  %v575_v22 = vpop.f32.mrf.mxu1  ;;  %v2892_v28 = vor.u32 %v3145_v32, %v2891_v31  ;;  %v2876_v13 = vor.u32 %v3141_v46, %v2875_v45  ;;  %v3127_v29 = vld [vmem:[#allocation2 + $0x464] sm:$0xf]  ;;  %v2797_v45 = vld [vmem:[#allocation2 + $0x430] sm:$0xf0] }
  0xb1   : > { %v2880_v22 = vor.u32 %v3139_v18, %v2877_v58  ;;  %v3122_v58 = vld [vmem:[#allocation2 + $0x434] sm:$0xf0] }
  0xb2   : > { %1360 = vmatmul.bf16.vlgmr.msra.gmra.mxu0 %v3398_v15  ;;  %1762 = vmatpush.bf16.msra.mxu3 %v2892_v28 }
  0xb3   : > { %1424 = vmatpush.bf16.msrb.mxu0 %v2693_v50 }
  0xb4   : > { %1394 = vmatpush.bf16.msrb.mxu1 %v2593_v63  ;;  %2728 = vmatmul.msk.bf16.vlgmr.msra.gmra.mxu2 %vm534_vm0, %v3402_v30  ;;  %v2779_v63 = vld [vmem:[#allocation2 + $0x400] sm:$0xf] }
  0xb5   : > { %1798 = vmatpush.bf16.msra.mxu2 %v2896_v36  ;;  %v2780_v10 = vor.u32 %v3117_v47, %v2779_v63  ;;  %v2748_v36 = vor.u32 %v3109_v24, %v2747_v23  ;;  %v3146_v63 = vld [vmem:[#allocation2 + $0x4f4] sm:$0xf0]  ;;  %v2739_v47 = vld [vmem:[%s3317_s27 + $0x48] sm:$0xf] }
  0xb6   : > { %1763 = vmatpush.bf16.msra.mxu3 %v2876_v13  ;;  %v3130_v13 = vld [vmem:[#allocation2 + $0x474] sm:$0xf0] }
  0xb7   : > { %1425 = vmatpush.bf16.msrb.mxu0 %v2677_v62  ;;  %v586_v42 = vpop.f32.mrf.mxu2  ;;  %v611_v49 = vpop.f32.mrf.mxu3  ;;  %v2861_v62 = vld [vmem:[#allocation2 + $0x4b0] sm:$0xf0] }
  0xb8   : > { %1395 = vmatpush.bf16.msrb.mxu1 %v2577_v8  ;;  %v3435_v48 = vadd.f32 %v3407_v44, %v586_v42  ;;  %v552_v50 = vpop.f32.mrf.mxu0  ;;  %v622_v53 = vpop.f32.mrf.mxu1  ;;  %v2796_v44 = vor.u32 %v3121_v57, %v2795_v56  ;;  %v2864_v39 = vor.u32 %v3135_v61, %v2861_v62  ;;  %v3134_v42 = vld [vmem:[#allocation2 + $0x494] sm:$0xf0]  ;;  %v2819_v61 = vld [vmem:[#allocation2 + $0x448] sm:$0xf] }
  0xb9   : > { %v3438_v52 = vadd.f32 %v3409_v16, %v552_v50  ;;  %v2581_v16 = vor.u32 %v3066_v59, %v2578_v60  ;;  %1799 = vmatpush.bf16.msra.mxu2 %v2880_v22  ;;  %v2852_v46 = vor.u32 %v3134_v42, %v2851_v41  ;;  %v2835_v50 = vld [vmem:[#allocation2 + $0x468] sm:$0xf]  ;;  %v3115_v59 = vld [vmem:[#allocation2 + $0x404] sm:$0xf]  ;;  %v2781_v60 = vld [vmem:[#allocation2 + $0x410] sm:$0xf0] }
  0xba   : > { %v3126_v62 = vld [vmem:[#allocation2 + $0x454] sm:$0xf0] }
  0xbb   : > { %1426 = vmatpush.bf16.msrb.mxu0 %v2661_v7  ;;  %1396 = vmatmul.bf16.vlgmr.msrb.gmra.mxu1 %v3398_v15 }
  0xbc   : > { %1738 = vmatpush.bf16.msra.mxu1 %v2860_v11  ;;  %2730 = vmatmul.msk.bf16.vlgmr.msrb.gmra.mxu3 %vm534_vm0, %v3402_v30  ;;  %v3131_v11 = vld [vmem:[#allocation2 + $0x484] sm:$0xf] }
  0xbf   : > { %1427 = vmatpush.bf16.msrb.mxu0 %v2645_v17  ;;  %v588_v0 = vpop.f32.mrf.mxu2  ;;  %v640_v51 = vpop.f32.mrf.mxu3  ;;  %v3113_v17 = vld [vmem:[#allocation2 + $0x3ec] sm:$0xf0] }
  0xc0   : > { %1739 = vmatpush.bf16.msra.mxu1 %v2844_v20  ;;  %v3444_v3 = vadd.f32 %v3415_v1, %v588_v0  ;;  %v555_v6 = vpop.f32.mrf.mxu0  ;;  %v3446_v7 = vadd.f32 %v640_v51, %v622_v53  ;;  %v624_v9 = vpop.f32.mrf.mxu1  ;;  %v2848_v1 = vor.u32 %v3131_v11, %v2845_v12  ;;  %v2829_v20 = vld [vmem:[#allocation2 + $0x470] sm:$0xf0]  ;;  %v2784_v0 = vor.u32 %v3115_v59, %v2781_v60  ;;  %v3144_v51 = vld [vmem:[#allocation2 + $0x4ec] sm:$0xf]  ;;  %v2736_v59 = vld [vmem:[%s3317_s27 + $0x58] sm:$0xff] }
  0xc1   : > { %v3449_v8 = vadd.f32 %v3419_v4, %v555_v6  ;;  %v2764_v4 = vor.u32 %v3113_v17, %v2763_v14  ;;  %v2832_v34 = vor.u32 %v3127_v29, %v2829_v20  ;;  %v2901_v6 = vld [vmem:[#allocation2 + $0x4f8] sm:$0xf0]  ;;  %v2765_v11 = vld [vmem:[#allocation2 + $0x3f0] sm:$0xf0]  ;;  %v3105_v14 = vld [vmem:[%s3317_s27 + $0x4c] sm:$0xf] }
  0xc2   : > { %1365 = vmatmul.bf16.gmra.mxu0 %v3417_v2  ;;  %v2904_v12 = vor.u32 %v3144_v51, %v2901_v6  ;;  %v2741_v17 = vld [vmem:[%s3317_s27 + $0x50] sm:$0xf0]  ;;  %v1525_v51 = vunpack.c.h.b16 %v2736_v59 }
  0xc3   : > { %1428 = vmatpush.bf16.msrb.mxu0 %v2629_v25  ;;  %v3475_v27 = vor.u32 %v3105_v14, %v2741_v17 }
  0xc4   : > { %1740 = vmatpush.bf16.msra.mxu1 %v2828_v33  ;;  %2729 = vmatmul.msk.bf16.gmra.mxu2 %vm534_vm0, %v3421_v5 }
  0xc7   : > { %1429 = vmatpush.bf16.msrb.mxu0 %v2613_v37  ;;  %v591_v25 = vpop.f32.mrf.mxu2  ;;  %v642_v32 = vpop.f32.mrf.mxu3  ;;  %v3123_v37 = vld [vmem:[#allocation2 + $0x444] sm:$0xf] }
  0xc8   : > { %1741 = vmatpush.bf16.msra.mxu1 %v2812_v54  ;;  %v3455_v31 = vadd.f32 %v3426_v19, %v591_v25  ;;  %v557_v33 = vpop.f32.mrf.mxu0  ;;  %v3457_v35 = vadd.f32 %v642_v32, %v624_v9  ;;  %v627_v28 = vpop.f32.mrf.mxu1  ;;  %v2816_v43 = vor.u32 %v3123_v37, %v2813_v38  ;;  %v3119_v19 = vld [vmem:[#allocation2 + $0x424] sm:$0xf]  ;;  %v3106_v9 = vld [vmem:[%s3317_s27 + $0x4c] sm:$0xf0]  ;;  %v2869_v37 = vld [vmem:[#allocation2 + $0x4b8] sm:$0xf0] }
  0xc9   : > { %v3473_v23 = vor.u32 %v3106_v9, %v2739_v47  ;;  %v3107_v32 = vld [vmem:[#allocation2 + $0x3c4] sm:$0xf]  ;;  %v2749_v33 = vld [vmem:[#allocation2 + $0x3d0] sm:$0xf0]  ;;  %v2787_v38 = vld [vmem:[#allocation2 + $0x408] sm:$0xf] }
  0xca   : > { %v2752_v41 = vor.u32 %v3107_v32, %v2749_v33  ;;  %v3140_v47 = vld [vmem:[#allocation2 + $0x4cc] sm:$0xf] }
  0xcb   : > { %1430 = vmatpush.bf16.msrb.mxu0 %v2597_v55  ;;  %1401 = vmatmul.bf16.gmra.mxu1 %v3417_v2  ;;  %v2800_v55 = vor.u32 %v3119_v19, %v2797_v45  ;;  %v3132_v19 = vld [vmem:[#allocation2 + $0x48c] sm:$0xf] }
  0xcc   : > { %1742 = vmatpush.bf16.msra.mxu1 %v2796_v44  ;;  %2731 = vmatmul.msk.bf16.gmra.mxu3 %vm534_vm0, %v3421_v5  ;;  %v2836_v44 = vor.u32 %v3130_v13, %v2835_v50 }
  0xcf   : > { %1431 = vmatpush.bf16.msrb.mxu0 %v2581_v16  ;;  %v593_v49 = vpop.f32.mrf.mxu2  ;;  %v645_v53 = vpop.f32.mrf.mxu3  ;;  %v2899_v16 = vld [vmem:[#allocation2 + $0x4e8] sm:$0xf] }
  0xd0   : > { %1743 = vmatpush.bf16.msra.mxu1 %v2780_v10  ;;  %v658_v54 = vpop.f32.mrf.mxu0  ;;  %v3462_v56 = vadd.f32 %v645_v53, %v627_v28  ;;  %v629_v57 = vpop.f32.mrf.mxu1  ;;  %v3111_v10 = vld [vmem:[#allocation2 + $0x3e4] sm:$0xf]  ;;  %v3114_v49 = vld [vmem:[#allocation2 + $0x3f4] sm:$0xf0] }
  0xd1   : > { %v2768_v24 = vor.u32 %v3111_v10, %v2765_v11  ;;  %v3124_v10 = vld [vmem:[#allocation2 + $0x44c] sm:$0xf]  ;;  %v2821_v11 = vld [vmem:[#allocation2 + $0x458] sm:$0xf0] }
  0xd2   : > { %1432 = vmatmul.bf16.vlgmr.msrb.gmra.mxu0 %v3398_v15  ;;  %v2820_v15 = vor.u32 %v3126_v62, %v2819_v61  ;;  %v2837_v61 = vld [vmem:[#allocation2 + $0x478] sm:$0xf0]  ;;  %v2755_v62 = vld [vmem:[#allocation2 + $0x3c8] sm:$0xf] }
  0xd3   : > { %1774 = vmatpush.bf16.msra.mxu0 %v2864_v39  ;;  %v2900_v39 = vor.u32 %v3146_v63, %v2899_v16  ;;  %v3110_v16 = vld [vmem:[#allocation2 + $0x3d4] sm:$0xf0]  ;;  %v1524_v63 = vunpack.c.l.b16 %v2736_v59 }
  0xd4   : > { %1744 = vmatpush.bf16.msra.mxu1 %v2764_v4  ;;  %2732 = vmatmul.msk.bf16.vlgmr.msrb.gmra.mxu2 %vm534_vm0, %v3402_v30  ;;  %v2883_v30 = vld [vmem:[#allocation2 + $0x4c8] sm:$0xf]  ;;  %v3142_v4 = vld [vmem:[#allocation2 + $0x4d4] sm:$0xf0]  ;;  %v2756_v9 = vor.u32 %v3110_v16, %v2755_v62 }
  0xd5   : > { %1834 = vmatpush.bf16.msrb.mxu3 %v2900_v39  ;;  %1870 = vmatpush.bf16.msrb.mxu2 %v2904_v12  ;;  %v2884_v25 = vor.u32 %v3142_v4, %v2883_v30  ;;  %v3120_v30 = vld [vmem:[#allocation2 + $0x42c] sm:$0xf]  ;;  %v2805_v4 = vld [vmem:[#allocation2 + $0x438] sm:$0xf0] }
  0xd7   : > { %1775 = vmatpush.bf16.msra.mxu0 %v2848_v1  ;;  %v2803_v1 = vld [vmem:[#allocation2 + $0x428] sm:$0xf]  ;;  %v676_v18 = vpop.f32.mrf.mxu2  ;;  %v647_v29 = vpop.f32.mrf.mxu3 }
  0xd8   : > { %1745 = vmatpush.bf16.msra.mxu1 %v2748_v36  ;;  %v3471_v20 = vadd.f32 %v676_v18, %v658_v54  ;;  %v660_v22 = vpop.f32.mrf.mxu0  ;;  %v915_v26 = vpop.f32.mrf.mxu1  ;;  %v2804_v28 = vor.u32 %v3122_v58, %v2803_v1  ;;  %v3136_v36 = vld [vmem:[#allocation2 + $0x4ac] sm:$0xf]  ;;  %v3497_v1 = vpack.c.b16 %v1525_v51, %v1525_v51  ;;  %v2824_v18 = vor.u32 %v3124_v10, %v2821_v11 }
  0xd9   : > { %1835 = vmatpush.bf16.msrb.mxu3 %v2884_v25  ;;  %v2872_v42 = vor.u32 %v3136_v36, %v2869_v37  ;;  %v2808_v29 = vor.u32 %v3120_v30, %v2805_v4  ;;  %v3112_v36 = vld [vmem:[#allocation2 + $0x3ec] sm:$0xf]  ;;  %v2773_v37 = vld [vmem:[#allocation2 + $0x3f8] sm:$0xf0] }
  0xdb   : > { %1776 = vmatpush.bf16.msra.mxu0 %v2832_v34  ;;  %v916_v34 = vadd.f32 %v915_v26, %v3429_v21  ;;  %1746 = vmatmul.bf16.vlgmr.msra.gmra.mxu1 %v3473_v23  ;;  %v2853_v21 = vld [vmem:[#allocation2 + $0x498] sm:$0xf0] }
  0xdc   : > { %1810 = vmatpush.bf16.msrb.mxu1 %v2868_v40  ;;  %v3118_v40 = vld [vmem:[#allocation2 + $0x414] sm:$0xf0]  ;;  %2905 = vmatmul.msk.bf16.vlgmr.msra.gmra.mxu3 %vm534_vm0, %v3475_v27  ;;  %v2856_v57 = vor.u32 %v3132_v19, %v2853_v21 }
  0xdf   : > { %1777 = vmatpush.bf16.msra.mxu0 %v2816_v43  ;;  %v2788_v43 = vor.u32 %v3118_v40, %v2787_v38  ;;  %v678_v45 = vpop.f32.mrf.mxu2  ;;  %v933_v13 = vpop.f32.mrf.mxu3  ;;  %v2776_v38 = vor.u32 %v3112_v36, %v2773_v37  ;;  %v3108_v40 = vld [vmem:[#allocation2 + $0x3cc] sm:$0xf] }
  0xe0   : > { %1811 = vmatpush.bf16.msrb.mxu1 %v2852_v46  ;;  %v2771_v46 = vld [vmem:[#allocation2 + $0x3e8] sm:$0xf]  ;;  %v3481_v50 = vadd.f32 %v678_v45, %v660_v22  ;;  %v663_v53 = vpop.f32.mrf.mxu0  ;;  %v3483_v54 = vadd.f32 %v933_v13, %v916_v34  ;;  %v3116_v22 = vld [vmem:[#allocation2 + $0x40c] sm:$0xf] }
  0xe1   : > { %v2772_v60 = vor.u32 %v3114_v49, %v2771_v46 }
  0xe2   : > { %1437 = vmatmul.bf16.gmra.mxu0 %v3417_v2 }
  0xe3   : > { %1778 = vmatpush.bf16.msra.mxu0 %v2800_v55  ;;  %v3485_v55 = vpop.f32.mrf.mxu1 }
  0xe4   : > { %1812 = vmatpush.bf16.msrb.mxu1 %v2836_v44  ;;  %v3128_v44 = vld [vmem:[#allocation2 + $0x46c] sm:$0xf]  ;;  %2733 = vmatmul.msk.bf16.gmra.mxu2 %vm534_vm0, %v3421_v5 }
  0xe5   : > { %v2840_v6 = vor.u32 %v3128_v44, %v2837_v61 }
  0xe7   : > { %1779 = vmatpush.bf16.msra.mxu0 %v2784_v0  ;;  %v2885_v0 = vld [vmem:[#allocation2 + $0x4d8] sm:$0xf0]  ;;  %v681_v12 = vpop.f32.mrf.mxu2  ;;  %v3493_v2 = vpop.f32.mrf.mxu3 }
  0xe8   : > { %1813 = vmatpush.bf16.msrb.mxu1 %v2820_v15  ;;  %v2888_v39 = vor.u32 %v3140_v47, %v2885_v0  ;;  %v3491_v14 = vadd.f32 %v681_v12, %v663_v53  ;;  %v665_v17 = vpop.f32.mrf.mxu0  ;;  %v3495_v15 = vpack.c.b16 %v1524_v63, %v1524_v63 }
  0xea   : > { %1871 = vmatpush.bf16.msrb.mxu2 %v2888_v39 }
  0xeb   : > { %1780 = vmatpush.bf16.msra.mxu0 %v2768_v24  ;;  %v920_v5 = vpop.f32.mrf.mxu1  ;;  %1751 = vmatmul.bf16.gmra.mxu1 %v3495_v15  ;;  %v2789_v24 = vld [vmem:[#allocation2 + $0x418] sm:$0xf0] }
  0xec   : > { %1814 = vmatpush.bf16.msrb.mxu1 %v2804_v28  ;;  %v921_v58 = vadd.f32 %v920_v5, %v3449_v8  ;;  %2906 = vmatmul.msk.bf16.gmra.mxu3 %vm534_vm0, %v3497_v1  ;;  %v2792_v28 = vor.u32 %v3116_v22, %v2789_v24 }
  0xef   : > { %1781 = vmatpush.bf16.msra.mxu0 %v2752_v41  ;;  %v683_v25 = vpop.f32.mrf.mxu2  ;;  %v938_v26 = vpop.f32.mrf.mxu3  ;;  %v2757_v41 = vld [vmem:[#allocation2 + $0x3d8] sm:$0xf0] }
  0xf0   : > { %1815 = vmatpush.bf16.msrb.mxu1 %v2788_v43  ;;  %v951_v32 = vpop.f32.mrf.mxu0  ;;  %v3503_v33 = vadd.f32 %v938_v26, %v921_v58  ;;  %v2760_v46 = vor.u32 %v3108_v40, %v2757_v41 }
  0xf1   : > { %v952_v8 = vadd.f32 %v951_v32, %v3435_v48 }
  0xf2   : > { %1782 = vmatmul.bf16.vlgmr.msra.gmra.mxu0 %v3473_v23 }
  0xf3   : > { %1846 = vmatpush.bf16.msrb.mxu0 %v2872_v42  ;;  %v922_v34 = vpop.f32.mrf.mxu1 }
  0xf4   : > { %1816 = vmatpush.bf16.msrb.mxu1 %v2772_v60  ;;  %2907 = vmatmul.msk.bf16.vlgmr.msra.gmra.mxu2 %vm534_vm0, %v3475_v27 }
  0xf7   : > { %1847 = vmatpush.bf16.msrb.mxu0 %v2856_v57  ;;  %v969_v42 = vpop.f32.mrf.mxu2  ;;  %v940_v43 = vpop.f32.mrf.mxu3 }
  0xf8   : > { %1817 = vmatpush.bf16.msrb.mxu1 %v2756_v9  ;;  %v3509_v19 = vadd.f32 %v969_v42, %v952_v8  ;;  %v953_v21 = vpop.f32.mrf.mxu0 }
  0xf9   : > { %v954_v48 = vadd.f32 %v953_v21, %v3444_v3 }
  0xfb   : > { %1848 = vmatpush.bf16.msrb.mxu0 %v2840_v6  ;;  %v987_v45 = vpop.f32.mrf.mxu1  ;;  %1818 = vmatmul.bf16.vlgmr.msrb.gmra.mxu1 %v3473_v23 }
  0xfc   : > { %v988_v49 = vadd.f32 %v987_v45, %v3446_v7  ;;  %2909 = vmatmul.msk.bf16.vlgmr.msrb.gmra.mxu3 %vm534_vm0, %v3475_v27 }
  0xff   : > { %1849 = vmatpush.bf16.msrb.mxu0 %v2824_v18  ;;  %v971_v13 = vpop.f32.mrf.mxu2  ;;  %v1005_v57 = vpop.f32.mrf.mxu3 }
 0x100   : > { %v3516_v53 = vadd.f32 %v971_v13, %v954_v48  ;;  %v956_v59 = vpop.f32.mrf.mxu0  ;;  %v3518_v60 = vadd.f32 %v1005_v57, %v988_v49 }
 0x101   : > { %v957_v3 = vadd.f32 %v956_v59, %v3455_v31 }
 0x102   : > { %1787 = vmatmul.bf16.gmra.mxu0 %v3495_v15 }
 0x103   : > { %1850 = vmatpush.bf16.msrb.mxu0 %v2808_v29  ;;  %v989_v44 = vpop.f32.mrf.mxu1 }
 0x104   : > { %v990_v61 = vadd.f32 %v989_v44, %v3457_v35  ;;  %2908 = vmatmul.msk.bf16.gmra.mxu2 %vm534_vm0, %v3497_v1 }
 0x107   : > { %1851 = vmatpush.bf16.msrb.mxu0 %v2792_v28  ;;  %v974_v7 = vpop.f32.mrf.mxu2  ;;  %v1007_v16 = vpop.f32.mrf.mxu3 }
 0x108   : > { %v3525_v62 = vadd.f32 %v974_v7, %v957_v3  ;;  %v958_v63 = vpop.f32.mrf.mxu0  ;;  %v3527_v47 = vadd.f32 %v1007_v16, %v990_v61 }
 0x10b   : > { %1852 = vmatpush.bf16.msrb.mxu0 %v2776_v38  ;;  %v992_v0 = vpop.f32.mrf.mxu1  ;;  %1823 = vmatmul.bf16.gmra.mxu1 %v3495_v15 }
 0x10c   : > { %v993_v51 = vadd.f32 %v992_v0, %v3462_v56  ;;  %2910 = vmatmul.msk.bf16.gmra.mxu3 %vm534_vm0, %v3497_v1 }
 0x10f   : > { %1853 = vmatpush.bf16.msrb.mxu0 %v2760_v46  ;;  %v976_v31 = vpop.f32.mrf.mxu2  ;;  %v1010_v35 = vpop.f32.mrf.mxu3 }
 0x110   : > { %v1023_v6 = vpop.f32.mrf.mxu0  ;;  %v3533_v39 = vadd.f32 %v1010_v35, %v993_v51 }
 0x111   : > { %v1024_v9 = vadd.f32 %v1023_v6, %v3471_v20 }
 0x112   : > { %1854 = vmatmul.bf16.vlgmr.msrb.gmra.mxu0 %v3473_v23 }
 0x113   : > { %v994_v10 = vpop.f32.mrf.mxu1 }
 0x114   : > { %2911 = vmatmul.msk.bf16.vlgmr.msrb.gmra.mxu2 %vm534_vm0, %v3475_v27  ;;  %v918_v27 = vadd.f32 %v3485_v55, %v3438_v52 }
 0x116   : > { %v936_v34 = vadd.f32 %v3493_v2, %v918_v27 }
 0x117   : > { %v1041_v11 = vpop.f32.mrf.mxu2  ;;  %v1012_v56 = vpop.f32.mrf.mxu3 }
 0x118   : > { %v3539_v12 = vadd.f32 %v1041_v11, %v1024_v9  ;;  %v1025_v17 = vpop.f32.mrf.mxu0 }
 0x119   : > { %v1026_v5 = vadd.f32 %v1025_v17, %v3481_v50  ;;  %v3152_v17 = vld [vmem:[%s3663_s2 + $0x28] sm:$0xff] }
 0x11b   : > { %v1325_v18 = vpop.f32.mrf.mxu1 }
 0x11f   : > { %v1043_v58 = vpop.f32.mrf.mxu2  ;;  %v1343_v4 = vpop.f32.mrf.mxu3 }
 0x120   : > { %v3542_v30 = vadd.f32 %v1043_v58, %v1026_v5  ;;  %v1028_v29 = vpop.f32.mrf.mxu0  ;;  %v1344_v20 = vadd.f32 %v1343_v4, %v1325_v18 }
 0x121   : > { %v1029_v22 = vadd.f32 %v1028_v29, %v3491_v14 }
 0x122   : > { %v3546_v24 = vadd.f32 %v1344_v20, %v3483_v54  ;;  %1859 = vmatmul.bf16.gmra.mxu0 %v3495_v15 }
 0x123   : > { %v1327_v23 = vpop.f32.mrf.mxu1 }
 0x124   : > { %2912 = vmatmul.msk.bf16.gmra.mxu2 %vm534_vm0, %v3497_v1 }
 0x127   : > { %v1046_v50 = vpop.f32.mrf.mxu2  ;;  %v1345_v26 = vpop.f32.mrf.mxu3 }
 0x128   : > { %v3553_v25 = vadd.f32 %v1046_v50, %v1029_v22  ;;  %v1030_v32 = vpop.f32.mrf.mxu0  ;;  %v1346_v14 = vadd.f32 %v1345_v26, %v1327_v23  ;;  %v3149_v22 = vld [vmem:[%s3663_s2 + $0x10] sm:$0xff] }
 0x12a   : > { %v3556_v28 = vadd.f32 %v1346_v14, %v936_v34  ;;  %v3148_v14 = vld [vmem:[%s3663_s2 + $0x8] sm:$0xff] }
 0x12b   : > { %v1330_v8 = vpop.f32.mrf.mxu1 }
 0x12f   : > { %v1048_v54 = vpop.f32.mrf.mxu2  ;;  %v1348_v36 = vpop.f32.mrf.mxu3 }
 0x130   : > { %v1361_v15 = vpop.f32.mrf.mxu0  ;;  %v1349_v37 = vadd.f32 %v1348_v36, %v1330_v8  ;;  %v3161_v8 = vld [vmem:[%s3663_s2 + $0x70] sm:$0xff]  ;;  %v3147_v54 = vld [vmem:[%s3663_s2] sm:$0xff] }
 0x132   : > { %v3559_v1 = vadd.f32 %v1349_v37, %v3503_v33 }
 0x133   : > { %v1332_v38 = vpop.f32.mrf.mxu1 }
 0x134   : > { %v3160_v38 = vld [vmem:[%s3663_s2 + $0x68] sm:$0xff] }
 0x137   : > { %v1379_v52 = vpop.f32.mrf.mxu2  ;;  %v1350_v55 = vpop.f32.mrf.mxu3 }
 0x138   : > { %v1380_v40 = vadd.f32 %v1379_v52, %v1361_v15  ;;  %v1363_v41 = vpop.f32.mrf.mxu0  ;;  %v3159_v52 = vld [vmem:[%s3663_s2 + $0x60] sm:$0xff] }
 0x13a   : > { %v3562_v43 = vadd.f32 %v1380_v40, %v3509_v19 }
 0x13b   : > { %v1397_v42 = vpop.f32.mrf.mxu1 }
 0x13f   : > { %v1381_v2 = vpop.f32.mrf.mxu2  ;;  %v1415_v48 = vpop.f32.mrf.mxu3 }
 0x140   : > { %v1382_v21 = vadd.f32 %v1381_v2, %v1363_v41  ;;  %v1366_v45 = vpop.f32.mrf.mxu0  ;;  %v1416_v46 = vadd.f32 %v1415_v48, %v1397_v42  ;;  %v3158_v2 = vld [vmem:[%s3663_s2 + $0x58] sm:$0xff]  ;;  %v3157_v48 = vld [vmem:[%s3663_s2 + $0x50] sm:$0xff] }
 0x142   : > { %v3565_v13 = vadd.f32 %v1382_v21, %v3516_v53  ;;  %v3568_v33 = vadd.f32 %v1416_v46, %v3518_v60  ;;  %v3154_v60 = vld [vmem:[%s3663_s2 + $0x38] sm:$0xff] }
 0x143   : > { %v1399_v49 = vpop.f32.mrf.mxu1  ;;  %2044 = vmatpush.bf16.msra.mxu1 %v3154_v60 }
 0x147   : > { %v1384_v57 = vpop.f32.mrf.mxu2  ;;  %v1417_v3 = vpop.f32.mrf.mxu3 }
 0x148   : > { %v1385_v59 = vadd.f32 %v1384_v57, %v1366_v45  ;;  %v1368_v44 = vpop.f32.mrf.mxu0  ;;  %v1418_v61 = vadd.f32 %v1417_v3, %v1399_v49 }
 0x149   : > { %v3156_v44 = vld [vmem:[%s3663_s2 + $0x48] sm:$0xff] }
 0x14a   : > { %v3571_v19 = vadd.f32 %v1385_v59, %v3525_v62  ;;  %v3574_v16 = vadd.f32 %v1418_v61, %v3527_v47  ;;  %v3153_v62 = vld [vmem:[%s3663_s2 + $0x30] sm:$0xff] }
 0x14b   : > { %v1402_v7 = vpop.f32.mrf.mxu1  ;;  %2045 = vmatpush.bf16.msra.mxu1 %v3153_v62 }
 0x14f   : > { %v1386_v63 = vpop.f32.mrf.mxu2  ;;  %v1420_v0 = vpop.f32.mrf.mxu3  ;;  %2046 = vmatpush.bf16.msra.mxu1 %v3152_v17 }
 0x150   : > { %v1433_v51 = vpop.f32.mrf.mxu0  ;;  %v1421_v53 = vadd.f32 %v1420_v0, %v1402_v7 }
 0x152   : > { %v3580_v35 = vadd.f32 %v1421_v53, %v3533_v39  ;;  %v3151_v39 = vld [vmem:[%s3663_s2 + $0x20] sm:$0xff] }
 0x153   : > { %v1404_v31 = vpop.f32.mrf.mxu1  ;;  %2047 = vmatpush.bf16.msra.mxu1 %v3151_v39 }
 0x157   : > { %v1451_v6 = vpop.f32.mrf.mxu2  ;;  %v1422_v47 = vpop.f32.mrf.mxu3 }
 0x158   : > { %v1452_v9 = vadd.f32 %v1451_v6, %v1433_v51  ;;  %v1435_v10 = vpop.f32.mrf.mxu0  ;;  %v3155_v51 = vld [vmem:[%s3663_s2 + $0x40] sm:$0xff] }
 0x15a   : > { %v3586_v56 = vadd.f32 %v1452_v9, %v3539_v12  ;;  %v3150_v12 = vld [vmem:[%s3663_s2 + $0x18] sm:$0xff] }
 0x15b   : > { %v1747_v11 = vpop.f32.mrf.mxu1  ;;  %2048 = vmatpush.bf16.msra.mxu1 %v3150_v12 }
 0x15f   : > { %v1453_v5 = vpop.f32.mrf.mxu2  ;;  %v1765_v58 = vpop.f32.mrf.mxu3  ;;  %2049 = vmatpush.bf16.msra.mxu1 %v3149_v22 }
 0x160   : > { %v1454_v18 = vadd.f32 %v1453_v5, %v1435_v10  ;;  %v1438_v4 = vpop.f32.mrf.mxu0  ;;  %v1766_v21 = vadd.f32 %v1765_v58, %v1747_v11 }
 0x162   : > { %v3595_v20 = vadd.f32 %v1454_v18, %v3542_v30  ;;  %v3162_v30 = vld [vmem:[%s3663_s2 + $0x78] sm:$0xff]  ;;  %v1882_v57 = vadd.f32 %v1766_v21, %v3546_v24 }
 0x163   : > { %v1749_v29 = vpop.f32.mrf.mxu1  ;;  %2062 = vmatpush.bf16.msra.mxu3 %v3162_v30  ;;  %2050 = vmatpush.bf16.msra.mxu1 %v3148_v14 }
 0x164   : > { %v1894_v7 = vmul.f32 %v1882_v57, %v1882_v57 }
 0x167   : > { %v1456_v23 = vpop.f32.mrf.mxu2  ;;  %v1767_v50 = vpop.f32.mrf.mxu3  ;;  %2063 = vmatpush.bf16.msra.mxu3 %v3161_v8  ;;  %2051 = vmatpush.bf16.msra.mxu1 %v3147_v54 }
 0x168   : > { %v1457_v27 = vadd.f32 %v1456_v23, %v1438_v4  ;;  %v1440_v26 = vpop.f32.mrf.mxu0  ;;  %v1768_v63 = vadd.f32 %v1767_v50, %v1749_v29 }
 0x16a   : > { %v3604_v34 = vadd.f32 %v1457_v27, %v3553_v25  ;;  %v1886_v62 = vadd.f32 %v1768_v63, %v3556_v28 }
 0x16b   : > { %v1752_v32 = vpop.f32.mrf.mxu1  ;;  %2064 = vmatpush.bf16.msra.mxu3 %v3160_v38 }
 0x16f   : > { %v1458_v25 = vpop.f32.mrf.mxu2  ;;  %v1770_v36 = vpop.f32.mrf.mxu3  ;;  %2065 = vmatpush.bf16.msra.mxu3 %v3159_v52 }
 0x170   : > { %v1783_v15 = vpop.f32.mrf.mxu0  ;;  %v1771_v10 = vadd.f32 %v1770_v36, %v1752_v32 }
 0x172   : > { %v1890_v58 = vadd.f32 %v1771_v10, %v3559_v1 }
 0x173   : > { %v1754_v37 = vpop.f32.mrf.mxu1  ;;  %2066 = vmatpush.bf16.msra.mxu3 %v3158_v2 }
 0x174   : > { %v1898_v23 = vmul.f32 %v1890_v58, %v1890_v58 }
 0x177   : > { %v1801_v55 = vpop.f32.mrf.mxu2  ;;  %v1772_v40 = vpop.f32.mrf.mxu3  ;;  %2067 = vmatpush.bf16.msra.mxu3 %v3157_v48 }
 0x178   : > { %v1785_v41 = vpop.f32.mrf.mxu0  ;;  %v1802_v28 = vadd.f32 %v1801_v55, %v1783_v15 }
 0x17a   : > { %v1883_v26 = vadd.f32 %v1802_v28, %v3562_v43 }
 0x17b   : > { %v1819_v42 = vpop.f32.mrf.mxu1  ;;  %2068 = vmatpush.bf16.msra.mxu3 %v3156_v44 }
 0x17c   : > { %v1895_v54 = vmul.f32 %v1883_v26, %v1883_v26 }
 0x17f   : > { %v1803_v45 = vpop.f32.mrf.mxu2  ;;  %v1837_v46 = vpop.f32.mrf.mxu3  ;;  %2069 = vmatpush.bf16.msra.mxu3 %v3155_v51 }
 0x180   : > { %v1788_v49 = vpop.f32.mrf.mxu0  ;;  %v1838_v59 = vadd.f32 %v1837_v46, %v1819_v42  ;;  %v1804_v1 = vadd.f32 %v1803_v45, %v1785_v41 }
 0x182   : > { %v1884_v61 = vadd.f32 %v1838_v59, %v3568_v33  ;;  %v1896_v33 = vmul.f32 %v1886_v62, %v1886_v62 }
 0x183   : > { %v1821_v3 = vpop.f32.mrf.mxu1 }
 0x184   : > { %v1900_v0 = vmul.f32 %v1884_v61, %v1884_v61 }
 0x186   : > { %v1906_v53 = vadd.f32 %v1900_v0, %v1894_v7 }
 0x187   : > { %v1806_v31 = vpop.f32.mrf.mxu2  ;;  %v1839_v60 = vpop.f32.mrf.mxu3 }
 0x188   : > { %v1790_v24 = vpop.f32.mrf.mxu0  ;;  %v1840_v6 = vadd.f32 %v1839_v60, %v1821_v3  ;;  %v1807_v43 = vadd.f32 %v1806_v31, %v1788_v49 }
 0x18a   : > { %v1888_v9 = vadd.f32 %v1840_v6, %v3574_v16 }
 0x18b   : > { %v1824_v47 = vpop.f32.mrf.mxu1 }
 0x18c   : > { %v1902_v11 = vmul.f32 %v1888_v9, %v1888_v9 }
 0x18e   : > { %v1908_v17 = vadd.f32 %v1902_v11, %v1896_v33 }
 0x18f   : > { %v1808_v39 = vpop.f32.mrf.mxu2  ;;  %v1842_v5 = vpop.f32.mrf.mxu3 }
 0x190   : > { %v1855_v18 = vpop.f32.mrf.mxu0  ;;  %v1912_v4 = vpack.c.bf16 %v1908_v17, %v1906_v53  ;;  %v1843_v29 = vadd.f32 %v1842_v5, %v1824_v47 }
 0x192   : > { %v1892_v22 = vadd.f32 %v1843_v29, %v3580_v35  ;;  %2052 = vmatmul.bf16.vlgmr.msra.gmra.mxu1 %v1912_v4  ;;  %v1887_v35 = vadd.f32 %v1804_v1, %v3565_v13 }
 0x193   : > { %v1826_v12 = vpop.f32.mrf.mxu1 }
 0x194   : > { %v1904_v27 = vmul.f32 %v1892_v22, %v1892_v22  ;;  %v1897_v40 = vmul.f32 %v1887_v35, %v1887_v35 }
 0x196   : > { %v1910_v16 = vadd.f32 %v1904_v27, %v1898_v23 }
 0x197   : > { %v1873_v50 = vpop.f32.mrf.mxu2  ;;  %v1844_v14 = vpop.f32.mrf.mxu3 }
 0x198   : > { %v1874_v32 = vadd.f32 %v1873_v50, %v1855_v18  ;;  %v1857_v30 = vpop.f32.mrf.mxu0  ;;  %v1914_v52 = vpack.c.bf16 %v1910_v16, %v1910_v16 }
 0x19a   : > { %v1885_v8 = vadd.f32 %v1874_v32, %v3586_v56  ;;  %v1891_v56 = vadd.f32 %v1807_v43, %v3571_v19 }
 0x19c   : > { %v1901_v25 = vmul.f32 %v1885_v8, %v1885_v8  ;;  %v1899_v13 = vmul.f32 %v1891_v56, %v1891_v56 }
 0x19e   : > { %v1907_v36 = vadd.f32 %v1901_v25, %v1895_v54 }
 0x19f   : > { %v1875_v37 = vpop.f32.mrf.mxu2 }
 0x1a0   : > { %v1876_v38 = vadd.f32 %v1875_v37, %v1857_v30  ;;  %v1860_v15 = vpop.f32.mrf.mxu0 }
 0x1a2   : > { %v1889_v55 = vadd.f32 %v1876_v38, %v3595_v20  ;;  %2057 = vmatmul.bf16.gmra.mxu1 %v1914_v52 }
 0x1a4   : > { %v1903_v42 = vmul.f32 %v1889_v55, %v1889_v55 }
 0x1a6   : > { %v1909_v2 = vadd.f32 %v1903_v42, %v1897_v40 }
 0x1a7   : > { %v1878_v21 = vpop.f32.mrf.mxu2 }
 0x1a8   : > { %v1913_v48 = vpack.c.bf16 %v1909_v2, %v1907_v36  ;;  %v1879_v41 = vadd.f32 %v1878_v21, %v1860_v15  ;;  %v1862_v45 = vpop.f32.mrf.mxu0 }
 0x1aa   : > { %v1893_v46 = vadd.f32 %v1879_v41, %v3604_v34  ;;  %2070 = vmatmul.bf16.vlgmr.msra.gmra.mxu3 %v1913_v48 }
 0x1ac   : > { %v1905_v57 = vmul.f32 %v1893_v46, %v1893_v46 }
 0x1ae   : > { %v1911_v59 = vadd.f32 %v1905_v57, %v1899_v13 }
 0x1af   : > { %v1880_v3 = vpop.f32.mrf.mxu2 }
 0x1b0   : > { %v1915_v20 = vpack.c.bf16 %v1911_v59, %v1911_v59 }
 0x1ba   : > { %2075 = vmatmul.bf16.gmra.mxu3 %v1915_v20 }
 0x20f   : > { %v2053_v44 = vpop.f32.mrf.mxu1 }
 0x210   : > { %v2054_v63 = vadd.f32 1e-06, %v2053_v44 }
 0x217   : > { %v2055_v49 = vpop.f32.mrf.mxu1 }
 0x218   : > { %v2056_v51 = vadd.f32 1e-06, %v2055_v49 }
 0x21f   : > { %v2058_v61 = vpop.f32.mrf.mxu1 }
 0x220   : > { %v2059_v24 = vadd.f32 1e-06, %v2058_v61 }
 0x227   : > { %v2060_v7 = vpop.f32.mrf.mxu1 }
 0x22d   : > { %v2071_v0 = vpop.f32.mrf.mxu3 }
 0x22e   : > { %v2072_v19 = vadd.f32 %v2071_v0, %v2054_v63 }
 0x230   : > { %3202 = vlog2.f32 %v2072_v19 }
 0x235   : > { %v2073_v53 = vpop.f32.mrf.mxu3 }
 0x236   : > { %v3203_v34 = vpop.eup %3202  ;;  %v2074_v31 = vadd.f32 %v2073_v53, %v2056_v51 }
 0x237   : > { %v2081_v60 = vmul.f32 0.6931472, %v3203_v34 }
 0x238   : > { %3204 = vlog2.f32 %v2074_v31 }
 0x239   : > { %2086 = vst [vmem:[%s228_s17] sm:$0xff] %v2081_v60 }
 0x23d   : > { %v2076_v62 = vpop.f32.mrf.mxu3 }
 0x23e   : > { %v3205_v6 = vpop.eup %3204  ;;  %v2077_v47 = vadd.f32 %v2076_v62, %v2059_v24 }
 0x23f   : > { %v2083_v9 = vmul.f32 0.6931472, %v3205_v6 }
 0x240   : > { %3206 = vlog2.f32 %v2077_v47 }
 0x241   : > { %2087 = vst [vmem:[%s228_s17 + $0x8] sm:$0xff] %v2083_v9 }
 0x245   : > { %v2078_v33 = vpop.f32.mrf.mxu3 }
 0x246   : > { %v3207_v10 = vpop.eup %3206 }
 0x247   : > { %v2085_v11 = vmul.f32 0.6931472, %v3207_v10 }
 0x249   : > { %2088 = vst [vmem:[%s228_s17 + $0x10] sm:$0xff] %v2085_v11 }
 0x24a PF: > { %s14_s14 = sadd.s32 1, %s3264_s14   ;;  %s3665_s12 = smov %s3260_s13 }
 0x24b   : > { %p11_p8 = scmp.ge.s32.totalorder %s14_s14, 4   ;;  %s3666_s13 = smov %s3668_s16 }
 0x24d   :  { %13 = sbr.rel (!%p11_p8) target bundleno = 2 (0x2), region = 73 }
 0x252   :  { %2119 = vsyncpa [#allocation3], 1 }
 0x253   :  { %2121 = vsyncpa [#allocation3 + $0x1], 1 }

</bundles_post_ra>
